<compile_context>
chip_gen: v6e
topology: v6e:2x2x1
jax: 0.10.0
libtpu: 0.0.40
codegen_flags: <defaults>
</compile_context>

<pallas_src>
import functools

import jax
import jax.numpy as jnp
import numpy as np
from jax.experimental import pallas as pl
from jax.experimental.pallas import tpu as pltpu


def _lambda_layer_kernel(x_ref, w_ref, b_ref, wp_ref, bp_ref, mask_ref, out_ref, *,
                         heads, kd, vd, u_depth, height, width, recept, bt,
                         nq, nk, nv, nq_p, nk_p):
    n = height * width
    ntot = bt * n
    pad = recept // 2

    # ---- fused q/k/v 1x1 convs (+ folded BN affine): ONE bf16 MXU matmul over
    #      all `bt` images of this block (images concatenated along lanes). ----
    proj = jnp.dot(w_ref[...], x_ref[...],
                   preferred_element_type=jnp.float32) + b_ref[...]
    q = proj[:nq, :]                                   # (heads*kd, ntot)
    kk = proj[nq_p:nq_p + nk, :]                       # (u*kd,     ntot)
    v = proj[nq_p + nk_p:nq_p + nk_p + nv, :]          # (u*vd,     ntot)

    # ---- position lambdas (Conv3d, kernel (1,R,R), zero padded), batched over
    #      all images: each tap = lane roll (XLU) + host-precomputed boundary
    #      mask + tap-wise VPU outer-product FMA (no stacked concatenate, no
    #      vd-expanded weight). Masked-in lanes never read wrapped data. -------
    wp = wp_ref[...]                                   # (kd, R*R*u)
    masks = mask_ref[...]                              # (R*R, ntot)
    lam_p = [jnp.zeros((kd, ntot), jnp.float32) for _ in range(vd)]
    tap = 0
    for dh in range(-pad, pad + 1):
        for dw in range(-pad, pad + 1):
            off = dh * width + dw
            rolled = v if off == 0 else pltpu.roll(v, shift=(-off) % ntot, axis=1)
            masked = rolled * masks[tap:tap + 1, :]    # (u*vd, ntot)
            for uu in range(u_depth):
                c = tap * u_depth + uu
                wcol = wp[:, c:c + 1]                  # (kd, 1)
                for vc in range(vd):
                    r = uu * vd + vc
                    lam_p[vc] = lam_p[vc] + wcol * masked[r:r + 1, :]
            tap += 1

    # ---- per-image softmax + content lambda; lam_c (+ pos-conv bias) is lane-
    #      broadcast into that image's lane segment so the epilogue below is one
    #      batched per-lane contraction.  (u_depth>1 sublane slices assume
    #      kd % 8 == 0, true for the module's defaults.) -----------------------
    lam_c_cols = [[] for _ in range(vd)]
    for b in range(bt):
        lo = b * n
        kk_b = kk[:, lo:lo + n]
        v_b = v[:, lo:lo + n]
        kk_b = jnp.exp(kk_b - jnp.max(kk_b, axis=-1, keepdims=True))
        kk_b = kk_b * pl.reciprocal(jnp.sum(kk_b, axis=-1, keepdims=True),
                                    approx=True)
        lam_tc = jnp.zeros((kd, vd), jnp.float32)
        for uu in range(u_depth):
            lam_tc = lam_tc + jax.lax.dot_general(
                kk_b[uu * kd:(uu + 1) * kd, :], v_b[uu * vd:(uu + 1) * vd, :],
                (((1,), (1,)), ((), ())), preferred_element_type=jnp.float32)
        lam_tc = lam_tc + bp_ref[...]                  # add pos-conv bias (kd, 1)
        for vc in range(vd):
            lam_c_cols[vc].append(jnp.broadcast_to(lam_tc[:, vc:vc + 1], (kd, n)))

    lam_tot = [lam_p[vc] + jnp.concatenate(lam_c_cols[vc], axis=1)
               for vc in range(vd)]                    # vd x (kd, ntot)

    # ---- epilogue: Y[h*vd+vc, n] = sum_k q[h,k,n] * lam_tot[vc][k,n]
    #      one broadcast multiply + one sublane reduction -> a single dense
    #      (out_ch, bt*n) lane-wide store. ------------------------------------
    lam3 = jnp.stack(lam_tot, axis=0)                  # (vd, kd, ntot)
    lb = jnp.concatenate([lam3] * heads, axis=0)       # (heads*vd, kd, ntot)
    qb = jnp.concatenate(
        [q[h * kd:(h + 1) * kd, :][None] for h in range(heads) for _ in range(vd)],
        axis=0)                                        # (heads*vd, kd, ntot)
    out_ref[...] = jnp.sum(qb * lb, axis=1)            # (out_ch, ntot)


def _round_up(a, m=8):
    return ((a + m - 1) // m) * m


def _pick_block_batch(batch, n):
    """Largest divisor of `batch` <= 8 that keeps >= 2 grid steps when possible."""
    if n % 128 != 0:
        return batch  # keep per-image lane slices trivially aligned
    divs = [d for d in range(1, min(batch, 8) + 1) if batch % d == 0]
    multi = [d for d in divs if batch // d >= 2]
    return max(multi) if multi else max(divs)


def lambda_layer_forward(x, params, *, heads, kd, vd, u_depth, recept):
    B, cin, H, W = x.shape
    n = H * W
    out_ch = heads * vd
    nq, nk, nv = heads * kd, u_depth * kd, u_depth * vd
    S = recept * recept
    pad = recept // 2

    bt = _pick_block_batch(B, n)
    grid = B // bt
    ntot = bt * n

    # ---- lane-major activation layout: image b occupies lanes [b*n, (b+1)*n) --
    x_ln = x.reshape(B, cin, n).transpose(1, 0, 2).reshape(cin, B * n)
    x_ln = x_ln.astype(jnp.bfloat16)

    # ---- fused projection weight/bias (BN folded), sublane-padded blocks ------
    nq_p, nk_p, nv_p = _round_up(nq), _round_up(nk), _round_up(nv)
    rows_p = nq_p + nk_p + nv_p
    w_all = jnp.zeros((rows_p, cin), jnp.float32)
    w_all = w_all.at[:nq].set(params["wq"] * params["qs"])
    w_all = w_all.at[nq_p:nq_p + nk].set(params["wk"])
    w_all = w_all.at[nq_p + nk_p:nq_p + nk_p + nv].set(params["wv"] * params["vs"])
    w_all = w_all.astype(jnp.bfloat16)
    b_all = jnp.zeros((rows_p, 1), jnp.float32)
    b_all = b_all.at[:nq].set(params["qb"])
    b_all = b_all.at[nq_p + nk_p:nq_p + nk_p + nv].set(params["vb"])

    # ---- pos_conv weight columns: wp_cols[k, tap*u + uu] = wp_torch[k,uu,0,kh,kw]
    wp_cols = params["wp_torch"].reshape(kd, u_depth, S).transpose(0, 2, 1)
    wp_cols = wp_cols.reshape(kd, S * u_depth)
    bp_col = params["bp"].reshape(kd, 1)

    # ---- host-precomputed boundary masks (constant index_map input) ----------
    lane = jnp.arange(ntot) % n
    col = lane % W
    row = lane // W
    mrows = []
    for dh in range(-pad, pad + 1):
        for dw in range(-pad, pad + 1):
            mrows.append((col + dw >= 0) & (col + dw < W)
                         & (row + dh >= 0) & (row + dh < H))
    mask = jnp.stack(mrows).astype(jnp.float32)        # (S, ntot)

    kernel = functools.partial(
        _lambda_layer_kernel, heads=heads, kd=kd, vd=vd, u_depth=u_depth,
        height=H, width=W, recept=recept, bt=bt,
        nq=nq, nk=nk, nv=nv, nq_p=nq_p, nk_p=nk_p)

    out = pl.pallas_call(
        kernel,
        out_shape=jax.ShapeDtypeStruct((out_ch, B * n), jnp.float32),
        grid=(grid,),
        in_specs=[
            pl.BlockSpec((cin, ntot), lambda i: (0, i)),      # x block (bt images)
            pl.BlockSpec((rows_p, cin), lambda i: (0, 0)),    # fused proj weight
            pl.BlockSpec((rows_p, 1), lambda i: (0, 0)),      # fused proj bias
            pl.BlockSpec((kd, S * u_depth), lambda i: (0, 0)),  # pos_conv taps
            pl.BlockSpec((kd, 1), lambda i: (0, 0)),          # pos_conv bias
            pl.BlockSpec((S, ntot), lambda i: (0, 0)),        # boundary masks
        ],
        out_specs=pl.BlockSpec((out_ch, ntot), lambda i: (0, i)),
        compiler_params=pltpu.CompilerParams(
            dimension_semantics=("parallel",)),
    )(x_ln, w_all, b_all, wp_cols, bp_col, mask)

    return out.reshape(out_ch, B, n).transpose(1, 0, 2).reshape(B, out_ch, H, W)


def init_params(key, *, in_ch, out_ch, kd, u_depth, recept, heads):
    """Deterministic synthetic parameters (no checkpoint loading)."""
    vd = out_ch // heads
    eps = 1e-5
    ks = jax.random.split(key, 14)
    sc = 0.2

    wq = sc * jax.random.normal(ks[0], (heads * kd, in_ch), jnp.float32)
    wk = sc * jax.random.normal(ks[1], (u_depth * kd, in_ch), jnp.float32)
    wv = sc * jax.random.normal(ks[2], (u_depth * vd, in_ch), jnp.float32)

    # BatchNorm2d (eval mode) -> folded per-channel affine
    q_gamma = 1.0 + 0.1 * jax.random.normal(ks[3], (heads * kd,), jnp.float32)
    q_beta = 0.1 * jax.random.normal(ks[4], (heads * kd,), jnp.float32)
    q_mean = 0.1 * jax.random.normal(ks[5], (heads * kd,), jnp.float32)
    q_var = 0.5 + jnp.abs(jax.random.normal(ks[6], (heads * kd,), jnp.float32))
    v_gamma = 1.0 + 0.1 * jax.random.normal(ks[7], (u_depth * vd,), jnp.float32)
    v_beta = 0.1 * jax.random.normal(ks[8], (u_depth * vd,), jnp.float32)
    v_mean = 0.1 * jax.random.normal(ks[9], (u_depth * vd,), jnp.float32)
    v_var = 0.5 + jnp.abs(jax.random.normal(ks[10], (u_depth * vd,), jnp.float32))

    qs = q_gamma / jnp.sqrt(q_var + eps)
    qb = q_beta - q_mean * qs
    vs = v_gamma / jnp.sqrt(v_var + eps)
    vb = v_beta - v_mean * vs

    # pos_conv: Conv3d weight (K, U, 1, R, R) + bias (K,)
    wp_torch = sc * jax.random.normal(ks[11], (kd, u_depth, 1, recept, recept),
                                      jnp.float32)
    bp = 0.1 * jax.random.normal(ks[12], (kd,), jnp.float32)

    return dict(
        wq=wq, wk=wk, wv=wv,
        qs=qs.reshape(heads * kd, 1), qb=qb.reshape(heads * kd, 1),
        vs=vs.reshape(u_depth * vd, 1), vb=vb.reshape(u_depth * vd, 1),
        wp_torch=wp_torch, bp=bp.reshape(kd, 1),
    )


def lambda_layer_reference(x, params, *, heads, kd, vd, u_depth, recept):
    """Pure-JAX reference mirroring the PyTorch forward (BN in eval mode)."""
    B, cin, H, W = x.shape
    n = H * W
    pad = recept // 2
    xf = x.reshape(B, cin, n)
    q = jnp.einsum('oc,bcn->bon', params["wq"], xf) * params["qs"][None] + params["qb"][None]
    k = jnp.einsum('oc,bcn->bon', params["wk"], xf)
    v = jnp.einsum('oc,bcn->bon', params["wv"], xf) * params["vs"][None] + params["vb"][None]
    q = q.reshape(B, heads, kd, n)
    k = jax.nn.softmax(k.reshape(B, u_depth, kd, n), axis=-1)
    v4 = v.reshape(B, u_depth, vd, n)
    lam_c = jnp.einsum('bukm,buvm->bkv', k, v4)
    yc = jnp.einsum('bhkn,bkv->bhvn', q, lam_c)
    v_p = v4.reshape(B, u_depth, vd, H, W)
    lam_p = jax.lax.conv_general_dilated(
        v_p, params["wp_torch"], window_strides=(1, 1, 1),
        padding=((0, 0), (pad, pad), (pad, pad)),
        dimension_numbers=('NCDHW', 'OIDHW', 'NCDHW'))
    lam_p = lam_p + params["bp"].reshape(1, kd, 1, 1, 1)
    lam_p = lam_p.reshape(B, kd, vd, n)
    yp = jnp.einsum('bhkn,bkvn->bhvn', q, lam_p)
    y = yc + yp
    return y.reshape(B, heads * vd, H, W)


if __name__ == "__main__":
    # Module config (defaults: query_depth=16, intra_depth=1, receptive=3, heads=4)
    B, IN_CH, H, W = 4, 4, 16, 16
    OUT_CH, KD, U, R, HEADS = 8, 16, 1, 3, 4
    VD = OUT_CH // HEADS

    key = jax.random.PRNGKey(0)
    kx, kp = jax.random.split(key)
    x = jax.random.normal(kx, (B, IN_CH, H, W), jnp.float32)
    params = init_params(kp, in_ch=IN_CH, out_ch=OUT_CH, kd=KD, u_depth=U,
                         recept=R, heads=HEADS)

    y = lambda_layer_forward(x, params, heads=HEADS, kd=KD, vd=VD,
                             u_depth=U, recept=R)
    y = jax.block_until_ready(y)
    assert y.shape == (B, OUT_CH, H, W), y.shape

    y_ref = jax.block_until_ready(
        lambda_layer_reference(x, params, heads=HEADS, kd=KD, vd=VD,
                               u_depth=U, recept=R))
    np.testing.assert_allclose(np.asarray(y), np.asarray(y_ref),
                               rtol=5e-2, atol=5e-2)
    print("KERNEL_OK")
</pallas_src>

<mosaic_0001>
module attributes {stable_mosaic.version = 11 : i64} {
  func.func @_lambda_layer_kernel(%arg0: i32, %arg1: memref<4x512xbf16, #tpu.memory_space<vmem>>, %arg2: memref<88x4xbf16, #tpu.memory_space<vmem>>, %arg3: memref<88x1xf32, #tpu.memory_space<vmem>>, %arg4: memref<16x9xf32, #tpu.memory_space<vmem>>, %arg5: memref<16x1xf32, #tpu.memory_space<vmem>>, %arg6: memref<9x512xf32, #tpu.memory_space<vmem>>, %arg7: memref<8x512xf32, #tpu.memory_space<vmem>>) attributes {dimension_semantics = [#tpu.dimension_semantics<parallel>], iteration_bounds = array<i64: 2>, scalar_prefetch = 0 : i64, scratch_operands = 0 : i64, tpu.core_type = #tpu.core_type<tc>, window_params = [{transform_indices = @transform_0, window_bounds = array<i64: 4, 512>}, {pipeline_mode = #tpu.pipeline_mode<synchronous>, transform_indices = @transform_1, window_bounds = array<i64: 88, 4>}, {pipeline_mode = #tpu.pipeline_mode<synchronous>, transform_indices = @transform_2, window_bounds = array<i64: 88, 1>}, {pipeline_mode = #tpu.pipeline_mode<synchronous>, transform_indices = @transform_3, window_bounds = array<i64: 16, 9>}, {pipeline_mode = #tpu.pipeline_mode<synchronous>, transform_indices = @transform_4, window_bounds = array<i64: 16, 1>}, {pipeline_mode = #tpu.pipeline_mode<synchronous>, transform_indices = @transform_5, window_bounds = array<i64: 9, 512>}, {transform_indices = @transform_6, window_bounds = array<i64: 8, 512>}]} {
    %c0 = arith.constant 0 : index
    %c0_0 = arith.constant 0 : index
    %0 = vector.load %arg2[%c0, %c0_0] : memref<88x4xbf16, #tpu.memory_space<vmem>>, vector<88x4xbf16>
    %c0_1 = arith.constant 0 : index
    %c0_2 = arith.constant 0 : index
    %1 = vector.load %arg1[%c0_1, %c0_2] : memref<4x512xbf16, #tpu.memory_space<vmem>>, vector<4x512xbf16>
    %cst = arith.constant dense<0.000000e+00> : vector<88x512xf32>
    %2 = tpu.matmul %0, %1, %cst {dimension_numbers = #tpu.dot_dimension_numbers<[1], [0], [0], [1], [0, 0, 1, 1], [], []>} : vector<88x4xbf16>, vector<4x512xbf16>, vector<88x512xf32> -> vector<88x512xf32>
    %c0_3 = arith.constant 0 : index
    %c0_4 = arith.constant 0 : index
    %3 = vector.load %arg3[%c0_3, %c0_4] : memref<88x1xf32, #tpu.memory_space<vmem>>, vector<88x1xf32>
    %4 = vector.broadcast %3 : vector<88x1xf32> to vector<88x512xf32>
    %5 = arith.addf %2, %4 : vector<88x512xf32>
    %6 = vector.extract_strided_slice %5 {offsets = [0, 0], sizes = [64, 512], strides = [1, 1]} : vector<88x512xf32> to vector<64x512xf32>
    %7 = vector.extract_strided_slice %5 {offsets = [64, 0], sizes = [16, 512], strides = [1, 1]} : vector<88x512xf32> to vector<16x512xf32>
    %8 = vector.extract_strided_slice %5 {offsets = [80, 0], sizes = [2, 512], strides = [1, 1]} : vector<88x512xf32> to vector<2x512xf32>
    %c0_5 = arith.constant 0 : index
    %c0_6 = arith.constant 0 : index
    %9 = vector.load %arg4[%c0_5, %c0_6] : memref<16x9xf32, #tpu.memory_space<vmem>>, vector<16x9xf32>
    %c0_7 = arith.constant 0 : index
    %c0_8 = arith.constant 0 : index
    %10 = vector.load %arg6[%c0_7, %c0_8] : memref<9x512xf32, #tpu.memory_space<vmem>>, vector<9x512xf32>
    %cst_9 = arith.constant 0.000000e+00 : f32
    %11 = vector.broadcast %cst_9 : f32 to vector<16x512xf32>
    %cst_10 = arith.constant 0.000000e+00 : f32
    %12 = vector.broadcast %cst_10 : f32 to vector<16x512xf32>
    %c17_i32 = arith.constant 17 : i32
    %13 = tpu.dynamic_rotate %8 by %c17_i32 dim 1 : vector<2x512xf32>, i32 -> vector<2x512xf32>
    %14 = vector.extract_strided_slice %10 {offsets = [0, 0], sizes = [1, 512], strides = [1, 1]} : vector<9x512xf32> to vector<1x512xf32>
    %15 = vector.broadcast %14 : vector<1x512xf32> to vector<2x512xf32>
    %16 = arith.mulf %13, %15 : vector<2x512xf32>
    %17 = vector.extract_strided_slice %9 {offsets = [0, 0], sizes = [16, 1], strides = [1, 1]} : vector<16x9xf32> to vector<16x1xf32>
    %18 = vector.extract_strided_slice %16 {offsets = [0, 0], sizes = [1, 512], strides = [1, 1]} : vector<2x512xf32> to vector<1x512xf32>
    %19 = vector.broadcast %17 : vector<16x1xf32> to vector<16x512xf32>
    %20 = vector.broadcast %18 : vector<1x512xf32> to vector<16x512xf32>
    %21 = arith.mulf %19, %20 : vector<16x512xf32>
    %22 = arith.addf %11, %21 : vector<16x512xf32>
    %23 = vector.extract_strided_slice %16 {offsets = [1, 0], sizes = [1, 512], strides = [1, 1]} : vector<2x512xf32> to vector<1x512xf32>
    %24 = vector.broadcast %17 : vector<16x1xf32> to vector<16x512xf32>
    %25 = vector.broadcast %23 : vector<1x512xf32> to vector<16x512xf32>
    %26 = arith.mulf %24, %25 : vector<16x512xf32>
    %27 = arith.addf %12, %26 : vector<16x512xf32>
    %c16_i32 = arith.constant 16 : i32
    %28 = tpu.dynamic_rotate %8 by %c16_i32 dim 1 : vector<2x512xf32>, i32 -> vector<2x512xf32>
    %29 = vector.extract_strided_slice %10 {offsets = [1, 0], sizes = [1, 512], strides = [1, 1]} : vector<9x512xf32> to vector<1x512xf32>
    %30 = vector.broadcast %29 : vector<1x512xf32> to vector<2x512xf32>
    %31 = arith.mulf %28, %30 : vector<2x512xf32>
    %32 = vector.extract_strided_slice %9 {offsets = [0, 1], sizes = [16, 1], strides = [1, 1]} : vector<16x9xf32> to vector<16x1xf32>
    %33 = vector.extract_strided_slice %31 {offsets = [0, 0], sizes = [1, 512], strides = [1, 1]} : vector<2x512xf32> to vector<1x512xf32>
    %34 = vector.broadcast %32 : vector<16x1xf32> to vector<16x512xf32>
    %35 = vector.broadcast %33 : vector<1x512xf32> to vector<16x512xf32>
    %36 = arith.mulf %34, %35 : vector<16x512xf32>
    %37 = arith.addf %22, %36 : vector<16x512xf32>
    %38 = vector.extract_strided_slice %31 {offsets = [1, 0], sizes = [1, 512], strides = [1, 1]} : vector<2x512xf32> to vector<1x512xf32>
    %39 = vector.broadcast %32 : vector<16x1xf32> to vector<16x512xf32>
    %40 = vector.broadcast %38 : vector<1x512xf32> to vector<16x512xf32>
    %41 = arith.mulf %39, %40 : vector<16x512xf32>
    %42 = arith.addf %27, %41 : vector<16x512xf32>
    %c15_i32 = arith.constant 15 : i32
    %43 = tpu.dynamic_rotate %8 by %c15_i32 dim 1 : vector<2x512xf32>, i32 -> vector<2x512xf32>
    %44 = vector.extract_strided_slice %10 {offsets = [2, 0], sizes = [1, 512], strides = [1, 1]} : vector<9x512xf32> to vector<1x512xf32>
    %45 = vector.broadcast %44 : vector<1x512xf32> to vector<2x512xf32>
    %46 = arith.mulf %43, %45 : vector<2x512xf32>
    %47 = vector.extract_strided_slice %9 {offsets = [0, 2], sizes = [16, 1], strides = [1, 1]} : vector<16x9xf32> to vector<16x1xf32>
    %48 = vector.extract_strided_slice %46 {offsets = [0, 0], sizes = [1, 512], strides = [1, 1]} : vector<2x512xf32> to vector<1x512xf32>
    %49 = vector.broadcast %47 : vector<16x1xf32> to vector<16x512xf32>
    %50 = vector.broadcast %48 : vector<1x512xf32> to vector<16x512xf32>
    %51 = arith.mulf %49, %50 : vector<16x512xf32>
    %52 = arith.addf %37, %51 : vector<16x512xf32>
    %53 = vector.extract_strided_slice %46 {offsets = [1, 0], sizes = [1, 512], strides = [1, 1]} : vector<2x512xf32> to vector<1x512xf32>
    %54 = vector.broadcast %47 : vector<16x1xf32> to vector<16x512xf32>
    %55 = vector.broadcast %53 : vector<1x512xf32> to vector<16x512xf32>
    %56 = arith.mulf %54, %55 : vector<16x512xf32>
    %57 = arith.addf %42, %56 : vector<16x512xf32>
    %c1_i32 = arith.constant 1 : i32
    %58 = tpu.dynamic_rotate %8 by %c1_i32 dim 1 : vector<2x512xf32>, i32 -> vector<2x512xf32>
    %59 = vector.extract_strided_slice %10 {offsets = [3, 0], sizes = [1, 512], strides = [1, 1]} : vector<9x512xf32> to vector<1x512xf32>
    %60 = vector.broadcast %59 : vector<1x512xf32> to vector<2x512xf32>
    %61 = arith.mulf %58, %60 : vector<2x512xf32>
    %62 = vector.extract_strided_slice %9 {offsets = [0, 3], sizes = [16, 1], strides = [1, 1]} : vector<16x9xf32> to vector<16x1xf32>
    %63 = vector.extract_strided_slice %61 {offsets = [0, 0], sizes = [1, 512], strides = [1, 1]} : vector<2x512xf32> to vector<1x512xf32>
    %64 = vector.broadcast %62 : vector<16x1xf32> to vector<16x512xf32>
    %65 = vector.broadcast %63 : vector<1x512xf32> to vector<16x512xf32>
    %66 = arith.mulf %64, %65 : vector<16x512xf32>
    %67 = arith.addf %52, %66 : vector<16x512xf32>
    %68 = vector.extract_strided_slice %61 {offsets = [1, 0], sizes = [1, 512], strides = [1, 1]} : vector<2x512xf32> to vector<1x512xf32>
    %69 = vector.broadcast %62 : vector<16x1xf32> to vector<16x512xf32>
    %70 = vector.broadcast %68 : vector<1x512xf32> to vector<16x512xf32>
    %71 = arith.mulf %69, %70 : vector<16x512xf32>
    %72 = arith.addf %57, %71 : vector<16x512xf32>
    %73 = vector.extract_strided_slice %10 {offsets = [4, 0], sizes = [1, 512], strides = [1, 1]} : vector<9x512xf32> to vector<1x512xf32>
    %74 = vector.broadcast %73 : vector<1x512xf32> to vector<2x512xf32>
    %75 = arith.mulf %8, %74 : vector<2x512xf32>
    %76 = vector.extract_strided_slice %9 {offsets = [0, 4], sizes = [16, 1], strides = [1, 1]} : vector<16x9xf32> to vector<16x1xf32>
    %77 = vector.extract_strided_slice %75 {offsets = [0, 0], sizes = [1, 512], strides = [1, 1]} : vector<2x512xf32> to vector<1x512xf32>
    %78 = vector.broadcast %76 : vector<16x1xf32> to vector<16x512xf32>
    %79 = vector.broadcast %77 : vector<1x512xf32> to vector<16x512xf32>
    %80 = arith.mulf %78, %79 : vector<16x512xf32>
    %81 = arith.addf %67, %80 : vector<16x512xf32>
    %82 = vector.extract_strided_slice %75 {offsets = [1, 0], sizes = [1, 512], strides = [1, 1]} : vector<2x512xf32> to vector<1x512xf32>
    %83 = vector.broadcast %76 : vector<16x1xf32> to vector<16x512xf32>
    %84 = vector.broadcast %82 : vector<1x512xf32> to vector<16x512xf32>
    %85 = arith.mulf %83, %84 : vector<16x512xf32>
    %86 = arith.addf %72, %85 : vector<16x512xf32>
    %c511_i32 = arith.constant 511 : i32
    %87 = tpu.dynamic_rotate %8 by %c511_i32 dim 1 : vector<2x512xf32>, i32 -> vector<2x512xf32>
    %88 = vector.extract_strided_slice %10 {offsets = [5, 0], sizes = [1, 512], strides = [1, 1]} : vector<9x512xf32> to vector<1x512xf32>
    %89 = vector.broadcast %88 : vector<1x512xf32> to vector<2x512xf32>
    %90 = arith.mulf %87, %89 : vector<2x512xf32>
    %91 = vector.extract_strided_slice %9 {offsets = [0, 5], sizes = [16, 1], strides = [1, 1]} : vector<16x9xf32> to vector<16x1xf32>
    %92 = vector.extract_strided_slice %90 {offsets = [0, 0], sizes = [1, 512], strides = [1, 1]} : vector<2x512xf32> to vector<1x512xf32>
    %93 = vector.broadcast %91 : vector<16x1xf32> to vector<16x512xf32>
    %94 = vector.broadcast %92 : vector<1x512xf32> to vector<16x512xf32>
    %95 = arith.mulf %93, %94 : vector<16x512xf32>
    %96 = arith.addf %81, %95 : vector<16x512xf32>
    %97 = vector.extract_strided_slice %90 {offsets = [1, 0], sizes = [1, 512], strides = [1, 1]} : vector<2x512xf32> to vector<1x512xf32>
    %98 = vector.broadcast %91 : vector<16x1xf32> to vector<16x512xf32>
    %99 = vector.broadcast %97 : vector<1x512xf32> to vector<16x512xf32>
    %100 = arith.mulf %98, %99 : vector<16x512xf32>
    %101 = arith.addf %86, %100 : vector<16x512xf32>
    %c497_i32 = arith.constant 497 : i32
    %102 = tpu.dynamic_rotate %8 by %c497_i32 dim 1 : vector<2x512xf32>, i32 -> vector<2x512xf32>
    %103 = vector.extract_strided_slice %10 {offsets = [6, 0], sizes = [1, 512], strides = [1, 1]} : vector<9x512xf32> to vector<1x512xf32>
    %104 = vector.broadcast %103 : vector<1x512xf32> to vector<2x512xf32>
    %105 = arith.mulf %102, %104 : vector<2x512xf32>
    %106 = vector.extract_strided_slice %9 {offsets = [0, 6], sizes = [16, 1], strides = [1, 1]} : vector<16x9xf32> to vector<16x1xf32>
    %107 = vector.extract_strided_slice %105 {offsets = [0, 0], sizes = [1, 512], strides = [1, 1]} : vector<2x512xf32> to vector<1x512xf32>
    %108 = vector.broadcast %106 : vector<16x1xf32> to vector<16x512xf32>
    %109 = vector.broadcast %107 : vector<1x512xf32> to vector<16x512xf32>
    %110 = arith.mulf %108, %109 : vector<16x512xf32>
    %111 = arith.addf %96, %110 : vector<16x512xf32>
    %112 = vector.extract_strided_slice %105 {offsets = [1, 0], sizes = [1, 512], strides = [1, 1]} : vector<2x512xf32> to vector<1x512xf32>
    %113 = vector.broadcast %106 : vector<16x1xf32> to vector<16x512xf32>
    %114 = vector.broadcast %112 : vector<1x512xf32> to vector<16x512xf32>
    %115 = arith.mulf %113, %114 : vector<16x512xf32>
    %116 = arith.addf %101, %115 : vector<16x512xf32>
    %c496_i32 = arith.constant 496 : i32
    %117 = tpu.dynamic_rotate %8 by %c496_i32 dim 1 : vector<2x512xf32>, i32 -> vector<2x512xf32>
    %118 = vector.extract_strided_slice %10 {offsets = [7, 0], sizes = [1, 512], strides = [1, 1]} : vector<9x512xf32> to vector<1x512xf32>
    %119 = vector.broadcast %118 : vector<1x512xf32> to vector<2x512xf32>
    %120 = arith.mulf %117, %119 : vector<2x512xf32>
    %121 = vector.extract_strided_slice %9 {offsets = [0, 7], sizes = [16, 1], strides = [1, 1]} : vector<16x9xf32> to vector<16x1xf32>
    %122 = vector.extract_strided_slice %120 {offsets = [0, 0], sizes = [1, 512], strides = [1, 1]} : vector<2x512xf32> to vector<1x512xf32>
    %123 = vector.broadcast %121 : vector<16x1xf32> to vector<16x512xf32>
    %124 = vector.broadcast %122 : vector<1x512xf32> to vector<16x512xf32>
    %125 = arith.mulf %123, %124 : vector<16x512xf32>
    %126 = arith.addf %111, %125 : vector<16x512xf32>
    %127 = vector.extract_strided_slice %120 {offsets = [1, 0], sizes = [1, 512], strides = [1, 1]} : vector<2x512xf32> to vector<1x512xf32>
    %128 = vector.broadcast %121 : vector<16x1xf32> to vector<16x512xf32>
    %129 = vector.broadcast %127 : vector<1x512xf32> to vector<16x512xf32>
    %130 = arith.mulf %128, %129 : vector<16x512xf32>
    %131 = arith.addf %116, %130 : vector<16x512xf32>
    %c495_i32 = arith.constant 495 : i32
    %132 = tpu.dynamic_rotate %8 by %c495_i32 dim 1 : vector<2x512xf32>, i32 -> vector<2x512xf32>
    %133 = vector.extract_strided_slice %10 {offsets = [8, 0], sizes = [1, 512], strides = [1, 1]} : vector<9x512xf32> to vector<1x512xf32>
    %134 = vector.broadcast %133 : vector<1x512xf32> to vector<2x512xf32>
    %135 = arith.mulf %132, %134 : vector<2x512xf32>
    %136 = vector.extract_strided_slice %9 {offsets = [0, 8], sizes = [16, 1], strides = [1, 1]} : vector<16x9xf32> to vector<16x1xf32>
    %137 = vector.extract_strided_slice %135 {offsets = [0, 0], sizes = [1, 512], strides = [1, 1]} : vector<2x512xf32> to vector<1x512xf32>
    %138 = vector.broadcast %136 : vector<16x1xf32> to vector<16x512xf32>
    %139 = vector.broadcast %137 : vector<1x512xf32> to vector<16x512xf32>
    %140 = arith.mulf %138, %139 : vector<16x512xf32>
    %141 = arith.addf %126, %140 : vector<16x512xf32>
    %142 = vector.extract_strided_slice %135 {offsets = [1, 0], sizes = [1, 512], strides = [1, 1]} : vector<2x512xf32> to vector<1x512xf32>
    %143 = vector.broadcast %136 : vector<16x1xf32> to vector<16x512xf32>
    %144 = vector.broadcast %142 : vector<1x512xf32> to vector<16x512xf32>
    %145 = arith.mulf %143, %144 : vector<16x512xf32>
    %146 = arith.addf %131, %145 : vector<16x512xf32>
    %147 = vector.extract_strided_slice %7 {offsets = [0, 0], sizes = [16, 256], strides = [1, 1]} : vector<16x512xf32> to vector<16x256xf32>
    %148 = vector.extract_strided_slice %8 {offsets = [0, 0], sizes = [2, 256], strides = [1, 1]} : vector<2x512xf32> to vector<2x256xf32>
    %cst_11 = arith.constant dense<0xFF800000> : vector<16xf32>
    %149 = vector.multi_reduction <maximumf>, %147, %cst_11 [1] : vector<16x256xf32> to vector<16xf32>
    %150 = vector.shape_cast %149 : vector<16xf32> to vector<16x1xf32>
    %151 = vector.broadcast %150 : vector<16x1xf32> to vector<16x256xf32>
    %152 = arith.subf %147, %151 : vector<16x256xf32>
    %153 = math.exp %152 : vector<16x256xf32>
    %cst_12 = arith.constant dense<0.000000e+00> : vector<16xf32>
    %154 = vector.multi_reduction <add>, %153, %cst_12 [1] : vector<16x256xf32> to vector<16xf32>
    %155 = vector.shape_cast %154 : vector<16xf32> to vector<16x1xf32>
    %156 = tpu.reciprocal %155 {approx = true} : vector<16x1xf32> -> vector<16x1xf32>
    %157 = vector.broadcast %156 : vector<16x1xf32> to vector<16x256xf32>
    %158 = arith.mulf %153, %157 : vector<16x256xf32>
    %cst_13 = arith.constant 0.000000e+00 : f32
    %159 = vector.broadcast %cst_13 : f32 to vector<16x2xf32>
    %cst_14 = arith.constant dense<0.000000e+00> : vector<16x2xf32>
    %160 = tpu.matmul %158, %148, %cst_14 {dimension_numbers = #tpu.dot_dimension_numbers<[1], [1], [0], [0], [0, 0, 1, 0], [], []>} : vector<16x256xf32>, vector<2x256xf32>, vector<16x2xf32> -> vector<16x2xf32>
    %161 = arith.addf %159, %160 : vector<16x2xf32>
    %c0_15 = arith.constant 0 : index
    %c0_16 = arith.constant 0 : index
    %162 = vector.load %arg5[%c0_15, %c0_16] : memref<16x1xf32, #tpu.memory_space<vmem>>, vector<16x1xf32>
    %163 = vector.broadcast %162 : vector<16x1xf32> to vector<16x2xf32>
    %164 = arith.addf %161, %163 : vector<16x2xf32>
    %165 = vector.extract_strided_slice %164 {offsets = [0, 0], sizes = [16, 1], strides = [1, 1]} : vector<16x2xf32> to vector<16x1xf32>
    %166 = vector.shape_cast %165 : vector<16x1xf32> to vector<16x1xf32>
    %167 = vector.broadcast %166 : vector<16x1xf32> to vector<16x256xf32>
    %168 = vector.extract_strided_slice %164 {offsets = [0, 1], sizes = [16, 1], strides = [1, 1]} : vector<16x2xf32> to vector<16x1xf32>
    %169 = vector.shape_cast %168 : vector<16x1xf32> to vector<16x1xf32>
    %170 = vector.broadcast %169 : vector<16x1xf32> to vector<16x256xf32>
    %171 = vector.extract_strided_slice %7 {offsets = [0, 256], sizes = [16, 256], strides = [1, 1]} : vector<16x512xf32> to vector<16x256xf32>
    %172 = vector.extract_strided_slice %8 {offsets = [0, 256], sizes = [2, 256], strides = [1, 1]} : vector<2x512xf32> to vector<2x256xf32>
    %cst_17 = arith.constant dense<0xFF800000> : vector<16xf32>
    %173 = vector.multi_reduction <maximumf>, %171, %cst_17 [1] : vector<16x256xf32> to vector<16xf32>
    %174 = vector.shape_cast %173 : vector<16xf32> to vector<16x1xf32>
    %175 = vector.broadcast %174 : vector<16x1xf32> to vector<16x256xf32>
    %176 = arith.subf %171, %175 : vector<16x256xf32>
    %177 = math.exp %176 : vector<16x256xf32>
    %cst_18 = arith.constant dense<0.000000e+00> : vector<16xf32>
    %178 = vector.multi_reduction <add>, %177, %cst_18 [1] : vector<16x256xf32> to vector<16xf32>
    %179 = vector.shape_cast %178 : vector<16xf32> to vector<16x1xf32>
    %180 = tpu.reciprocal %179 {approx = true} : vector<16x1xf32> -> vector<16x1xf32>
    %181 = vector.broadcast %180 : vector<16x1xf32> to vector<16x256xf32>
    %182 = arith.mulf %177, %181 : vector<16x256xf32>
    %cst_19 = arith.constant 0.000000e+00 : f32
    %183 = vector.broadcast %cst_19 : f32 to vector<16x2xf32>
    %cst_20 = arith.constant dense<0.000000e+00> : vector<16x2xf32>
    %184 = tpu.matmul %182, %172, %cst_20 {dimension_numbers = #tpu.dot_dimension_numbers<[1], [1], [0], [0], [0, 0, 1, 0], [], []>} : vector<16x256xf32>, vector<2x256xf32>, vector<16x2xf32> -> vector<16x2xf32>
    %185 = arith.addf %183, %184 : vector<16x2xf32>
    %c0_21 = arith.constant 0 : index
    %c0_22 = arith.constant 0 : index
    %186 = vector.load %arg5[%c0_21, %c0_22] : memref<16x1xf32, #tpu.memory_space<vmem>>, vector<16x1xf32>
    %187 = vector.broadcast %186 : vector<16x1xf32> to vector<16x2xf32>
    %188 = arith.addf %185, %187 : vector<16x2xf32>
    %189 = vector.extract_strided_slice %188 {offsets = [0, 0], sizes = [16, 1], strides = [1, 1]} : vector<16x2xf32> to vector<16x1xf32>
    %190 = vector.shape_cast %189 : vector<16x1xf32> to vector<16x1xf32>
    %191 = vector.broadcast %190 : vector<16x1xf32> to vector<16x256xf32>
    %192 = vector.extract_strided_slice %188 {offsets = [0, 1], sizes = [16, 1], strides = [1, 1]} : vector<16x2xf32> to vector<16x1xf32>
    %193 = vector.shape_cast %192 : vector<16x1xf32> to vector<16x1xf32>
    %194 = vector.broadcast %193 : vector<16x1xf32> to vector<16x256xf32>
    %195 = tpu.concatenate %167, %191 in 1 : vector<16x256xf32>, vector<16x256xf32> -> vector<16x512xf32>
    %196 = arith.addf %141, %195 : vector<16x512xf32>
    %197 = tpu.concatenate %170, %194 in 1 : vector<16x256xf32>, vector<16x256xf32> -> vector<16x512xf32>
    %198 = arith.addf %146, %197 : vector<16x512xf32>
    %199 = vector.shape_cast %196 : vector<16x512xf32> to vector<1x16x512xf32>
    %200 = vector.shape_cast %198 : vector<16x512xf32> to vector<1x16x512xf32>
    %201 = tpu.concatenate %199, %200 in 0 : vector<1x16x512xf32>, vector<1x16x512xf32> -> vector<2x16x512xf32>
    %202 = tpu.concatenate %201, %201, %201, %201 in 0 : vector<2x16x512xf32>, vector<2x16x512xf32>, vector<2x16x512xf32>, vector<2x16x512xf32> -> vector<8x16x512xf32>
    %203 = vector.extract_strided_slice %6 {offsets = [0, 0], sizes = [16, 512], strides = [1, 1]} : vector<64x512xf32> to vector<16x512xf32>
    %204 = vector.shape_cast %203 : vector<16x512xf32> to vector<1x16x512xf32>
    %205 = vector.extract_strided_slice %6 {offsets = [0, 0], sizes = [16, 512], strides = [1, 1]} : vector<64x512xf32> to vector<16x512xf32>
    %206 = vector.shape_cast %205 : vector<16x512xf32> to vector<1x16x512xf32>
    %207 = vector.extract_strided_slice %6 {offsets = [16, 0], sizes = [16, 512], strides = [1, 1]} : vector<64x512xf32> to vector<16x512xf32>
    %208 = vector.shape_cast %207 : vector<16x512xf32> to vector<1x16x512xf32>
    %209 = vector.extract_strided_slice %6 {offsets = [16, 0], sizes = [16, 512], strides = [1, 1]} : vector<64x512xf32> to vector<16x512xf32>
    %210 = vector.shape_cast %209 : vector<16x512xf32> to vector<1x16x512xf32>
    %211 = vector.extract_strided_slice %6 {offsets = [32, 0], sizes = [16, 512], strides = [1, 1]} : vector<64x512xf32> to vector<16x512xf32>
    %212 = vector.shape_cast %211 : vector<16x512xf32> to vector<1x16x512xf32>
    %213 = vector.extract_strided_slice %6 {offsets = [32, 0], sizes = [16, 512], strides = [1, 1]} : vector<64x512xf32> to vector<16x512xf32>
    %214 = vector.shape_cast %213 : vector<16x512xf32> to vector<1x16x512xf32>
    %215 = vector.extract_strided_slice %6 {offsets = [48, 0], sizes = [16, 512], strides = [1, 1]} : vector<64x512xf32> to vector<16x512xf32>
    %216 = vector.shape_cast %215 : vector<16x512xf32> to vector<1x16x512xf32>
    %217 = vector.extract_strided_slice %6 {offsets = [48, 0], sizes = [16, 512], strides = [1, 1]} : vector<64x512xf32> to vector<16x512xf32>
    %218 = vector.shape_cast %217 : vector<16x512xf32> to vector<1x16x512xf32>
    %219 = tpu.concatenate %204, %206, %208, %210, %212, %214, %216, %218 in 0 : vector<1x16x512xf32>, vector<1x16x512xf32>, vector<1x16x512xf32>, vector<1x16x512xf32>, vector<1x16x512xf32>, vector<1x16x512xf32>, vector<1x16x512xf32>, vector<1x16x512xf32> -> vector<8x16x512xf32>
    %220 = arith.mulf %219, %202 : vector<8x16x512xf32>
    %cst_23 = arith.constant dense<0.000000e+00> : vector<8x512xf32>
    %221 = vector.multi_reduction <add>, %220, %cst_23 [1] : vector<8x16x512xf32> to vector<8x512xf32>
    %c0_24 = arith.constant 0 : index
    %c0_25 = arith.constant 0 : index
    %222 = vector.load %arg7[%c0_24, %c0_25] : memref<8x512xf32, #tpu.memory_space<vmem>>, vector<8x512xf32>
    tpu.vector_store %arg7[%c0_24, %c0_25], %221 {strides = array<i32>} : memref<8x512xf32, #tpu.memory_space<vmem>>, vector<8x512xf32>,
    return
  }
  func.func @transform_0(%arg0: i32) -> (i32, i32) {
    %c0_i32 = arith.constant 0 : i32
    %c0_i32_0 = arith.constant 0 : i32
    return %c0_i32, %arg0 : i32, i32
  }
  func.func @transform_1(%arg0: i32) -> (i32, i32) {
    %c0_i32 = arith.constant 0 : i32
    %c0_i32_0 = arith.constant 0 : i32
    %c0_i32_1 = arith.constant 0 : i32
    return %c0_i32, %c0_i32_0 : i32, i32
  }
  func.func @transform_2(%arg0: i32) -> (i32, i32) {
    %c0_i32 = arith.constant 0 : i32
    %c0_i32_0 = arith.constant 0 : i32
    %c0_i32_1 = arith.constant 0 : i32
    return %c0_i32, %c0_i32_0 : i32, i32
  }
  func.func @transform_3(%arg0: i32) -> (i32, i32) {
    %c0_i32 = arith.constant 0 : i32
    %c0_i32_0 = arith.constant 0 : i32
    %c0_i32_1 = arith.constant 0 : i32
    return %c0_i32, %c0_i32_0 : i32, i32
  }
  func.func @transform_4(%arg0: i32) -> (i32, i32) {
    %c0_i32 = arith.constant 0 : i32
    %c0_i32_0 = arith.constant 0 : i32
    %c0_i32_1 = arith.constant 0 : i32
    return %c0_i32, %c0_i32_0 : i32, i32
  }
  func.func @transform_5(%arg0: i32) -> (i32, i32) {
    %c0_i32 = arith.constant 0 : i32
    %c0_i32_0 = arith.constant 0 : i32
    %c0_i32_1 = arith.constant 0 : i32
    return %c0_i32, %c0_i32_0 : i32, i32
  }
  func.func @transform_6(%arg0: i32) -> (i32, i32) {
    %c0_i32 = arith.constant 0 : i32
    %c0_i32_0 = arith.constant 0 : i32
    return %c0_i32, %arg0 : i32, i32
  }
}

</mosaic_0001>

<bundles_post_ra>
// kernel: tpu_custom_call.1
= control target key start
LH: loop header
LB: loop body
LE: loop exit
PB: predicated region body
PF: predicated region fallthrough
CT: control target
= control target key end

     0   :  { %11 = vsyncpa [#allocation3], 0  ;;  %s3875_s0 = inlined_call_operand.vmem [shape: bf16[4,1024], index: 0, kind: input, shape index: {}]   ;;  %s3876_s1 = inlined_call_operand.vmem [shape: bf16[88,4], index: 1, kind: input, shape index: {}]   ;;  %s3877_s2 = inlined_call_operand.vmem [shape: f32[88,1], index: 2, kind: input, shape index: {}]   ;;  %s3878_s3 = inlined_call_operand.vmem [shape: f32[16,9], index: 3, kind: input, shape index: {}]   ;;  %s3879_s4 = inlined_call_operand.vmem [shape: f32[16,1], index: 4, kind: input, shape index: {}]   ;;  %s3880_s5 = inlined_call_operand.vmem [shape: f32[9,512], index: 5, kind: input, shape index: {}]   ;;  %s3881_s6 = inlined_call_operand.hbm [shape: f32[8,1024], index: 6, kind: output, shape index: {}]  }
   0x1   :  { %13 = vsyncpa [#allocation3 + $0x1], 0  ;;  %s2515_s21 = smov 0   ;;  %s2517_s22 = smov 0  }
   0x2   :  { %s2519_s23 = smov 0   ;;  %s2521_s24 = smov 0  }
   0x3 LB: > { %s2536_s25 = sadd.s32 4294967295, %s2459_s24   ;;  %s2249_s26 = sadd.s32 4294967294, %s2459_s24   ;;  %s2459_s24 = sphi %s2521_s24, %s4115_s24   ;;  %s2455_s23 = sphi %s2519_s23, %s4114_s23   ;;  %s2451_s22 = sphi %s2517_s22, %s4113_s22   ;;  %s2447_s21 = sphi %s2515_s21, %s4112_s21  }
   0x4   : > { %s2540_s27 = sadd.s32 1, %s2459_s24   ;;  %s157_s28 = sadd.s32 1, %s2455_s23 }
   0x5   : > { %s154_s29 = ssub.s32 %s2459_s24, %s2540_s27  ;;  %p167_p0 = scmp.ne.s32.totalorder %s2455_s23, %s2451_s22 }
   0x6   : > { %p155_p1 = scmp.eq.s32.totalorder %s154_s29, 0  ;;  %p168_p2 = scmp.eq.s32.totalorder %s2536_s25, 1 }
   0x7   : > { %p173_p3 = scmp.ne.s32.totalorder %s2451_s22, %s2447_s21  ;;  %p174_p4 = scmp.eq.s32.totalorder %s2249_s26, 1 }
   0x8   : > { %s2551_s30 = scalar_select %p155_p1, %s2455_s23, %s157_s28  }
   0x9   : > { %p2553_p5 = por %p168_p2, %p167_p0  ;;  %p2557_p6 = por %p174_p4, %p173_p3 }
   0xa   : > { %p2252_p7 = scmp.ge.s32.totalorder %s2459_s24, 1  ;;  %p216_p8 = scmp.lt.s32.totalorder %s2459_s24, 3 }
   0xc   : > { %p217_p9 = pnand %p2252_p7, %p216_p8 }
   0xe   : > { %220 = sbr.rel (%p217_p9) target bundleno = 1004 (0x3ec), region = 44 }
  0x13   : > { %s2254_s9 = sshll.u32 %s2536_s25, 2  ;;  %v365_v0 = vlaneseq  ;;  %v2461_v1 = vmov 1983009808   ;;  %v3884_v3 = vmov 0   ;;  %v274_v7 = vld [vmem:[%s3877_s2 + $0x40] sm:$0xff]  ;;  %vm397_vm0 = vcmask 1041408  }
  0x14   : > { %p247_p10 = scmp.lt.s32.totalorder %s2254_s9, 7  ;;  %v363_v2 = vunpack.c.l.s4 %v2461_v1  ;;  %442 = vmatprep.mubr.bf16.mxu0 %v3884_v3  ;;  %533 = vmatprep.mubr.bf16.mxu1 %v3884_v3  ;;  %v275_v11 = vld [vmem:[%s3877_s2 + $0x48] sm:$0xff]  ;;  %v2369_v17 = vld [vmem:[%s3876_s1] sm:$0xff]   ;;  %vm378_vm1 = vcmask 31744   ;;  %v2371_v19 = vld [vmem:[%s3876_s1 + $0x10] sm:$0xff]   ;;  %s2464_s12 = smov 17  }
  0x15   : > { %v2567_v4 = vshrl.u32 %v365_v0, 7  ;;  %2343 = vset.pattern.permute.xlu0 %v3884_v3  ;;  %2344 = vset.pattern.permute.xlu1 %v3884_v3  ;;  %v2370_v18 = vld [vmem:[%s3876_s1 + $0x8] sm:$0xff]   ;;  %v2372_v20 = vld [vmem:[%s3876_s1 + $0x18] sm:$0xff]   ;;  %v2373_v21 = vld [vmem:[%s3876_s1 + $0x20] sm:$0xff]   ;;  %s2465_s15 = smov 16   ;;  %s2466_s18 = smov 15  }
  0x16   : > { %s4117_s9 = smov (!%p247_p10, %s2254_s9), 7  ;;  %v364_v5 = vunpack.c.0.s8 %v363_v2  ;;  %319 = vperm.xlu0 %2343, %v274_v7   ;;  %v2374_v22 = vld [vmem:[%s3876_s1 + $0x28] ss:$0 sps:$4 sm:$0xff]   ;;  %s2473_s16 = smov 113   ;;  %vm2132_vm10 = vcmask 1041409   ;;  %vm2134_vm11 = vcmask 1042434  }
  0x17   : > { %3930 = vst [vmem:[#allocation5_spill] sm:$0xff] %v2567_v4  ;;  %s2255_s10 = sshll.u32 %s4117_s9, 1  ;;  %s2475_s17 = smov 112   ;;  %vm2136_vm12 = vcmask 1043459   ;;  %vm2138_vm13 = vcmask 1044484   ;;  %vm2140_vm14 = vcmask 1045509  }
  0x18   : > { %v367_v6 = vsub.s32 %v364_v5, %v2567_v4  ;;  %s250_s13 = scalar_lea.vmem %s3875_s0, %s2255_s10  ;;  %s2468_s10 = smov 1   ;;  %vm2142_vm15 = vcmask 1046534  }
  0x19   : > { %v265_v8 = vld [vmem:[%s250_s13] sm:$0xff]  ;;  %s243_s20 = sand.u32 1, %s2451_s22   ;;  %s2285_s28 = sshll.u32 %s2536_s25, 9 }
  0x1a   : > { %v368_v9 = vrot.slane %v265_v8, %v367_v6  ;;  %v361_v10 = vcombine.high %v265_v8, %v265_v8  ;;  %324 = vperm.xlu0 %2343, %v275_v11   ;;  %s2253_s26 = sshll.u32 %s243_s20, 5  ;;  %s3828_s11 = scalar_lea.hbm %s3881_s6, %s2285_s28 }
  0x1b   : > { %s245_s29 = scalar_lea.vmem [#allocation2], %s2253_s26  ;;  %s2479_s14 = smov [#allocation2]  }
  0x1c   : > { %v376_v12 = vcombine.high %v368_v9, %v368_v9  ;;  %v399_v13 = vsel %vm397_vm0, %v368_v9, 0  ;;  %v375_v14 = vrot.slane %v361_v10, %v367_v6  ;;  %s2190_s9 = sshll.u32 %s245_s29, 4  ;;  %s3830_s9 = int_to_ptr.vmem [resolvable:$true] %s2190_s9 }
  0x1d   : > { %s2399_s13 = scalar_lea.vmem %s3830_s9, 512 }
  0x1e   : > { %2262 = vmatprep.subr.msk.bf16.mxu0 %vm397_vm0, %v376_v12  ;;  %v377_v15 = vcombine.high %v375_v14, %v375_v14  ;;  %v405_v16 = vsel %vm397_vm0, %v375_v14, 0  ;;  %p2400_p11 = scmp.ne.s32.totalorder %s3830_s9, %s2399_s13 }
  0x1f   : > { %425 = vmatpush1.bf16.msra.mxu0 %v399_v13 }
  0x20   : > { %2269 = vmatprep.subr.msk.bf16.mxu1 %vm397_vm0, %v377_v15  ;;  %vm2144_vm0 = vcmask 1047559   ;;  %p2401_p12 = pnand %p2400_p11, %p2553_p5 }
  0x21   : > { %516 = vmatpush1.bf16.msra.mxu1 %v405_v16 }
  0x22   : > { %2263 = vmatmul.mubr.msk.bf16.vlgmr.msra.gmra.mxu0 %vm378_vm1, %v2369_v17  ;;  %p2402_p13 = pneg %p2401_p12 }
  0x23   : > { %452 = vmatprep.mubr.bf16.mxu0 %v3884_v3 }
  0x24   : > { %2270 = vmatmul.mubr.msk.bf16.vlgmr.msra.gmra.mxu1 %vm378_vm1, %v2369_v17 }
  0x25   : > { %543 = vmatprep.mubr.bf16.mxu1 %v3884_v3 }
  0x2a   : > { %2264 = vmatmul.mubr.msk.bf16.gmra.mxu0 %vm378_vm1, %v2370_v18 }
  0x2b   : > { %462 = vmatprep.mubr.bf16.mxu0 %v3884_v3 }
  0x2c   : > { %2271 = vmatmul.mubr.msk.bf16.gmra.mxu1 %vm378_vm1, %v2370_v18 }
  0x2d   : > { %553 = vmatprep.mubr.bf16.mxu1 %v3884_v3 }
  0x32   : > { %2265 = vmatmul.mubr.msk.bf16.gmra.mxu0 %vm378_vm1, %v2371_v19 }
  0x33   : > { %472 = vmatprep.mubr.bf16.mxu0 %v3884_v3 }
  0x34   : > { %2272 = vmatmul.mubr.msk.bf16.gmra.mxu1 %vm378_vm1, %v2371_v19 }
  0x35   : > { %563 = vmatprep.mubr.bf16.mxu1 %v3884_v3 }
  0x3a   : > { %2266 = vmatmul.mubr.msk.bf16.gmra.mxu0 %vm378_vm1, %v2372_v20 }
  0x3b   : > { %482 = vmatprep.mubr.bf16.mxu0 %v3884_v3 }
  0x3c   : > { %2273 = vmatmul.mubr.msk.bf16.gmra.mxu1 %vm378_vm1, %v2372_v20 }
  0x3d   : > { %573 = vmatprep.mubr.bf16.mxu1 %v3884_v3 }
  0x42   : > { %2267 = vmatmul.mubr.msk.bf16.gmra.mxu0 %vm378_vm1, %v2373_v21 }
  0x43   : > { %492 = vmatprep.mubr.bf16.mxu0 %v3884_v3 }
  0x44   : > { %2274 = vmatmul.mubr.msk.bf16.gmra.mxu1 %vm378_vm1, %v2373_v21 }
  0x45   : > { %583 = vmatprep.mubr.bf16.mxu1 %v3884_v3 }
  0x4a   : > { %2268 = vmatmul.mubr.msk.bf16.gmra.mxu0 %vm378_vm1, %v2374_v22 }
  0x4c   : > { %2275 = vmatmul.mubr.msk.bf16.gmra.mxu1 %vm378_vm1, %v2374_v22 }
  0x91   : > { %v320_v54 = vpop.permute.xlu0 %319 }
  0x95   : > { %v325_v63 = vpop.permute.xlu0 %324 }
  0xe2   : > { %v2621_v23 = vpop.f32.mrf.mxu0 }
  0xe3   : > { %3931 = vst [vmem:[#allocation6_spill] sm:$0xff] %v2621_v23 }
  0xe4   : > { %v2623_v24 = vpop.f32.mrf.mxu0  ;;  %v2625_v25 = vpop.f32.mrf.mxu1 }
  0xe5   : > { %3932 = vst [vmem:[#allocation7_spill] sm:$0xff] %v2623_v24  ;;  %3933 = vst [vmem:[#allocation8_spill] sm:$0xff] %v2625_v25 }
  0xe6   : > { %v2627_v26 = vpop.f32.mrf.mxu0  ;;  %v2629_v27 = vpop.f32.mrf.mxu1 }
  0xe7   : > { %3934 = vst [vmem:[#allocation9_spill] sm:$0xff] %v2627_v26  ;;  %3935 = vst [vmem:[#allocation10_spill] sm:$0xff] %v2629_v27 }
  0xe8   : > { %v2631_v28 = vpop.f32.mrf.mxu0  ;;  %v2633_v29 = vpop.f32.mrf.mxu1 }
  0xe9   : > { %3936 = vst [vmem:[#allocation11_spill] sm:$0xff] %v2631_v28  ;;  %3937 = vst [vmem:[#allocation12_spill] sm:$0xff] %v2633_v29 }
  0xea   : > { %v2635_v30 = vpop.f32.mrf.mxu0  ;;  %v2637_v31 = vpop.f32.mrf.mxu1 }
  0xeb   : > { %3938 = vst [vmem:[#allocation13_spill] sm:$0xff] %v2635_v30  ;;  %3939 = vst [vmem:[#allocation14_spill] sm:$0xff] %v2637_v31 }
  0xec   : > { %v2639_v32 = vpop.f32.mrf.mxu0  ;;  %v2641_v33 = vpop.f32.mrf.mxu1 }
  0xed   : > { %3940 = vst [vmem:[#allocation15_spill] sm:$0xff] %v2639_v32  ;;  %3941 = vst [vmem:[#allocation16_spill] sm:$0xff] %v2641_v33 }
  0xee   : > { %v2643_v34 = vpop.f32.mrf.mxu0  ;;  %v2645_v35 = vpop.f32.mrf.mxu1 }
  0xef   : > { %3942 = vst [vmem:[#allocation17_spill] sm:$0xff] %v2643_v34  ;;  %3943 = vst [vmem:[#allocation18_spill] sm:$0xff] %v2645_v35 }
  0xf0   : > { %v2647_v36 = vpop.f32.mrf.mxu0  ;;  %v2649_v37 = vpop.f32.mrf.mxu1 }
  0xf1   : > { %3944 = vst [vmem:[#allocation19_spill] sm:$0xff] %v2647_v36  ;;  %3945 = vst [vmem:[#allocation20_spill] sm:$0xff] %v2649_v37 }
  0xf2   : > { %v2651_v38 = vpop.f32.mrf.mxu0  ;;  %v2653_v39 = vpop.f32.mrf.mxu1 }
  0xf3   : > { %3946 = vst [vmem:[#allocation21_spill] sm:$0xff] %v2651_v38  ;;  %3947 = vst [vmem:[#allocation22_spill] sm:$0xff] %v2653_v39  ;;  %v831_v38 = vsub.s32 2, %v2567_v4 }
  0xf4   : > { %v2655_v40 = vpop.f32.mrf.mxu0  ;;  %v2657_v41 = vpop.f32.mrf.mxu1 }
  0xf5   : > { %3948 = vst [vmem:[#allocation23_spill] sm:$0xff] %v2655_v40  ;;  %3949 = vst [vmem:[#allocation24_spill] sm:$0xff] %v2657_v41 }
  0xf6   : > { %v2659_v42 = vpop.f32.mrf.mxu0  ;;  %v2661_v43 = vpop.f32.mrf.mxu1 }
  0xf7   : > { %3950 = vst [vmem:[#allocation25_spill] sm:$0xff] %v2659_v42  ;;  %3951 = vst [vmem:[#allocation26_spill] sm:$0xff] %v2661_v43 }
  0xf8   : > { %v2663_v44 = vpop.f32.mrf.mxu0  ;;  %v2665_v45 = vpop.f32.mrf.mxu1 }
  0xf9   : > { %3952 = vst [vmem:[#allocation27_spill] sm:$0xff] %v2663_v44  ;;  %3953 = vst [vmem:[#allocation28_spill] sm:$0xff] %v2665_v45 }
  0xfa   : > { %v2667_v46 = vpop.f32.mrf.mxu0  ;;  %v2669_v47 = vpop.f32.mrf.mxu1 }
  0xfb   : > { %3954 = vst [vmem:[#allocation29_spill] sm:$0xff] %v2667_v46  ;;  %3955 = vst [vmem:[#allocation30_spill] sm:$0xff] %v2669_v47 }
  0xfc   : > { %v2671_v48 = vpop.f32.mrf.mxu0  ;;  %v2673_v49 = vpop.f32.mrf.mxu1 }
  0xfd   : > { %3956 = vst [vmem:[#allocation31_spill] sm:$0xff] %v2671_v48  ;;  %3957 = vst [vmem:[#allocation32_spill] sm:$0xff] %v2673_v49 }
  0xfe   : > { %v2675_v50 = vpop.f32.mrf.mxu0  ;;  %v2677_v51 = vpop.f32.mrf.mxu1 }
  0xff   : > { %3958 = vst [vmem:[#allocation33_spill] sm:$0xff] %v2675_v50  ;;  %3959 = vst [vmem:[#allocation34_spill] sm:$0xff] %v2677_v51 }
 0x100   : > { %v2679_v52 = vpop.f32.mrf.mxu0  ;;  %v2681_v53 = vpop.f32.mrf.mxu1 }
 0x101   : > { %3960 = vst [vmem:[#allocation35_spill] sm:$0xff] %v2679_v52  ;;  %3961 = vst [vmem:[#allocation36_spill] sm:$0xff] %v2681_v53 }
 0x102   : > { %v484_v55 = vpop.f32.mrf.mxu0  ;;  %v2683_v56 = vpop.f32.mrf.mxu1 }
 0x103   : > { %3962 = vst [vmem:[#allocation37_spill] sm:$0xff] %v2683_v56  ;;  %v485_v59 = vadd.f32 %v484_v55, %v320_v54 }
 0x104   : > { %v486_v57 = vpop.f32.mrf.mxu0  ;;  %v575_v58 = vpop.f32.mrf.mxu1 }
 0x105   : > { %v487_v60 = vadd.f32 %v486_v57, %v320_v54  ;;  %v576_v7 = vadd.f32 %v575_v58, %v320_v54 }
 0x106   : > { %v488_v61 = vpop.f32.mrf.mxu0  ;;  %v577_v62 = vpop.f32.mrf.mxu1 }
 0x107   : > { %v578_v1 = vadd.f32 %v577_v62, %v320_v54  ;;  %v1538_v2 = vmax.f32 %v485_v59, %v487_v60  ;;  %v489_v8 = vadd.f32 %v488_v61, %v325_v63 }
 0x108   : > { %v490_v5 = vpop.f32.mrf.mxu0  ;;  %v579_v6 = vpop.f32.mrf.mxu1 }
 0x109   : > { %v491_v9 = vadd.f32 %v490_v5, %v325_v63  ;;  %1539 = vmax.xlane.f32.xlu1 %v1538_v2  ;;  %v1673_v13 = vmax.f32 %v576_v7, %v578_v1  ;;  %v580_v14 = vadd.f32 %v579_v6, %v325_v63 }
 0x10a   : > { %v581_v10 = vpop.f32.mrf.mxu1 }
 0x10b   : > { %v582_v11 = vadd.f32 %v581_v10, %v325_v63  ;;  %v1541_v12 = vmax.f32 %v489_v8, %v491_v9 }
 0x10d   : > { %1542 = vmax.xlane.f32.xlu0 %v1541_v12  ;;  %1674 = vmax.xlane.f32.xlu1 %v1673_v13  ;;  %v1676_v15 = vmax.f32 %v580_v14, %v582_v11 }
 0x111   : > { %1677 = vmax.xlane.f32.xlu1 %v1676_v15 }
 0x192   : > { %v1540_v16 = vpop.xlane.xlu1 %1539 }
 0x193   : > { %v1544_v17 = vsub.f32 %v485_v59, %v1540_v16  ;;  %v1545_v18 = vsub.f32 %v487_v60, %v1540_v16 }
 0x195   : > { %v1548_v19 = vmul.f32 1.442695, %v1544_v17  ;;  %v1550_v20 = vmul.f32 1.442695, %v1545_v18 }
 0x196   : > { %v1543_v21 = vpop.xlane.xlu0 %1542  ;;  %v1675_v22 = vpop.xlane.xlu1 %1674 }
 0x197   : > { %2375 = vpow2.f32 %v1548_v19  ;;  %v1546_v54 = vsub.f32 %v489_v8, %v1543_v21  ;;  %v1679_v55 = vsub.f32 %v576_v7, %v1675_v22  ;;  %v1547_v57 = vsub.f32 %v491_v9, %v1543_v21  ;;  %v494_v19 = vpop.f32.mrf.mxu0  ;;  %v585_v21 = vpop.f32.mrf.mxu1 }
 0x198   : > { %2377 = vpow2.f32 %v1550_v20  ;;  %v1680_v58 = vsub.f32 %v578_v1, %v1675_v22 }
 0x199   : > { %v1683_v61 = vmul.f32 1.442695, %v1679_v55  ;;  %v1552_v2 = vmul.f32 1.442695, %v1546_v54  ;;  %v1554_v6 = vmul.f32 1.442695, %v1547_v57  ;;  %v496_v20 = vpop.f32.mrf.mxu0  ;;  %v587_v55 = vpop.f32.mrf.mxu1 }
 0x19a   : > { %v1685_v62 = vmul.f32 1.442695, %v1680_v58  ;;  %v1678_v63 = vpop.xlane.xlu1 %1677  ;;  %v276_v58 = vld [vmem:[%s3877_s2 + $0x50] sm:$0xff] }
 0x19b   : > { %v1681_v5 = vsub.f32 %v580_v14, %v1678_v63  ;;  %v1682_v10 = vsub.f32 %v582_v11, %v1678_v63  ;;  %2379 = vpow2.f32 %v1683_v61  ;;  %v498_v22 = vpop.f32.mrf.mxu0  ;;  %v589_v57 = vpop.f32.mrf.mxu1  ;;  %v268_v63 = vld [vmem:[%s3877_s2 + $0x10] sm:$0xff] }
 0x19c   : > { %2381 = vpow2.f32 %v1685_v62  ;;  %v267_v62 = vld [vmem:[%s3877_s2 + $0x8] sm:$0xff] }
 0x19d   : > { %2383 = vpow2.f32 %v1552_v2  ;;  %v1687_v59 = vmul.f32 1.442695, %v1681_v5  ;;  %v1689_v60 = vmul.f32 1.442695, %v1682_v10  ;;  %v499_v54 = vpop.f32.mrf.mxu0  ;;  %v590_v61 = vpop.f32.mrf.mxu1  ;;  %v269_v2 = vld [vmem:[%s3877_s2 + $0x18] sm:$0xff]  ;;  %v270_v5 = vld [vmem:[%s3877_s2 + $0x20] sm:$0xff] }
 0x19e   : > { %2385 = vpow2.f32 %v1554_v6  ;;  %v3882_v6 = vmov 1   ;;  %v272_v10 = vld [vmem:[%s3877_s2 + $0x30] sm:$0xff] }
 0x19f   : > { %2387 = vpow2.f32 %v1687_v59  ;;  %2346 = vset.pattern.permute.xlu0 %v3882_v6 }
 0x1a0   : > { %2389 = vpow2.f32 %v1689_v60 }
 0x1a4   : > { %v2685_v12 = vpop.eup %2375 }
 0x1a5   : > { %v2378_v7 = vpop.eup %2377 }
 0x1a6   : > { %v1556_v1 = vadd.f32 %v2378_v7, %v2685_v12 }
 0x1a8   : > { %1557 = vadd.xlane.f32.xlu1 %v1556_v1  ;;  %v2380_v8 = vpop.eup %2379 }
 0x1a9   : > { %v2382_v9 = vpop.eup %2381 }
 0x1aa   : > { %v2688_v13 = vpop.eup %2383  ;;  %v1691_v14 = vadd.f32 %v2382_v9, %v2380_v8 }
 0x1ab   : > { %v2386_v11 = vpop.eup %2385 }
 0x1ac   : > { %1692 = vadd.xlane.f32.xlu1 %v1691_v14  ;;  %v2690_v15 = vpop.eup %2387  ;;  %v1559_v16 = vadd.f32 %v2386_v11, %v2688_v13 }
 0x1ad   : > { %v2693_v17 = vpop.eup %2389 }
 0x1ae   : > { %v1694_v18 = vadd.f32 %v2693_v17, %v2690_v15 }
 0x1b0   : > { %1560 = vadd.xlane.f32.xlu1 %v1559_v16 }
 0x1b4   : > { %1695 = vadd.xlane.f32.xlu1 %v1694_v18 }
 0x1c5   : > { %329 = vperm.xlu1 %2344, %v276_v58  }
 0x1c9   : > { %284 = vperm.xlu1 %2344, %v267_v62  }
 0x1cd   : > { %289 = vperm.xlu1 %2344, %v268_v63  }
 0x1d1   : > { %294 = vperm.xlu1 %2344, %v269_v2  }
 0x1d5   : > { %299 = vperm.xlu1 %2344, %v270_v5   ;;  %v273_v5 = vld [vmem:[%s3877_s2 + $0x38] sm:$0xff] }
 0x1d9   : > { %309 = vperm.xlu1 %2344, %v272_v10   ;;  %v1569_v10 = vld [vmem:[%s3879_s4 + $0x8] sm:$0xff] }
 0x231   : > { %v1558_v59 = vpop.xlane.xlu1 %1557 }
 0x232   : > { %2391 = vrcp.f32 %v1558_v59  ;;  %v1568_v59 = vld [vmem:[%s3879_s4] sm:$0xff] }
 0x235   : > { %v1693_v60 = vpop.xlane.xlu1 %1692 }
 0x236   : > { %2393 = vrcp.f32 %v1693_v60  ;;  %v2469_v60 = vmov 3  }
 0x239   : > { %v1561_v1 = vpop.xlane.xlu1 %1560 }
 0x23a   : > { %2395 = vrcp.f32 %v1561_v1  ;;  %v2470_v1 = vmov 4  }
 0x23d   : > { %v1696_v16 = vpop.xlane.xlu1 %1695 }
 0x23e   : > { %2397 = vrcp.f32 %v1696_v16  ;;  %v2474_v16 = vmov 6  }
 0x23f   : > { %v2392_v14 = vpop.eup %2391 }
 0x240   : > { %v1565_v18 = vmul.f32 %v2392_v14, %v2378_v7 }
 0x241   : > { %v330_v22 = vpop.permute.xlu1 %329 }
 0x242   : > { %1644 = vmatprep.mubr.f32.mxu0 %v1565_v18  ;;  %v2716_v54 = vadd.f32 %v494_v19, %v330_v22  ;;  %v2718_v57 = vadd.f32 %v496_v20, %v330_v22  ;;  %v2720_v58 = vadd.f32 %v585_v21, %v330_v22  ;;  %v2722_v61 = vadd.f32 %v587_v55, %v330_v22 }
 0x243   : > { %v2394_v62 = vpop.eup %2393  ;;  %v1564_v20 = vmul.f32 %v2392_v14, %v2685_v12  ;;  %v2472_v14 = vmov 5   ;;  %v2476_v18 = vmov 7  }
 0x244   : > { %1733 = vmatprep.subr.mxu1 %v2722_v61  ;;  %604 = vrot.lane.b32.xlu0 %v2718_v57, %s2464_s12  ;;  %v1700_v63 = vmul.f32 %v2394_v62, %v2382_v9  ;;  %v1699_v19 = vmul.f32 %v2394_v62, %v2380_v8  ;;  %v2736_v9 = vld [vmem:[%s3878_s3] sm:$0xff]  ;;  %v2478_v62 = vmov 8  }
 0x245   : > { %1610 = vmatprep.subr.mxu0 %v2718_v57  ;;  %602 = vrot.lane.b32.xlu1 %v2716_v54, %s2464_s12  ;;  %v2798_v22 = vpop.permute.xlu1 %284 }
 0x246   : > { %1611 = vmatpush1.xpose.msra.mxu0 %v2716_v54  ;;  %1734 = vmatpush1.xpose.msra.mxu1 %v2720_v58  ;;  %3963 = vst [vmem:[#allocation38_spill] sm:$0xff] %v2798_v22 }
 0x247   : > { %v2396_v7 = vpop.eup %2395  ;;  %1767 = vmatprep.mubr.f32.mxu1 %v1700_v63 }
 0x248   : > { %608 = vrot.lane.b32.xlu0 %v2722_v61, %s2464_s12  ;;  %v1567_v21 = vmul.f32 %v2396_v7, %v2386_v11  ;;  %v1566_v8 = vmul.f32 %v2396_v7, %v2688_v13  ;;  %v2748_v11 = vld [vmem:[%s3878_s3 + $0x8] sm:$0xff]  ;;  %v2467_v13 = vmov 2  }
 0x249   : > { %1768 = vmatmul.mubr.f32.vlgmr.msra.gmra.mxu1 %v1699_v19  ;;  %606 = vrot.lane.b32.xlu1 %v2720_v58, %s2464_s12  ;;  %v2803_v63 = vpop.permute.xlu1 %289  ;;  %s2176_s12 = scalar_lea.sflag [#allocation3], %s243_s20 }
 0x24a   : > { %1645 = vmatmul.mubr.f32.vlgmr.msra.gmra.mxu0 %v1564_v20  ;;  %3964 = vst [vmem:[#allocation39_spill] sm:$0xff] %v2803_v63  ;;  %v2817_v20 = vand.u32 127, %v365_v0 }
 0x24b   : > { %v2398_v55 = vpop.eup %2397  ;;  %1649 = vmatprep.mubr.f32.mxu0 %v1567_v21 }
 0x24c   : > { %713 = vrot.lane.b32.xlu0 %v2718_v57, %s2465_s15  ;;  %v1702_v2 = vmul.f32 %v2398_v55, %v2693_v17  ;;  %v1701_v12 = vmul.f32 %v2398_v55, %v2690_v15  ;;  %v266_v15 = vld [vmem:[%s3877_s2] sm:$0xff]  ;;  %v271_v17 = vld [vmem:[%s3877_s2 + $0x28] sm:$0xff]  ;;  %vm612_vm2 = vcmp.lt.s32.totalorder %v2817_v20, 17  ;;  %vm719_vm3 = vcmp.lt.s32.totalorder %v2817_v20, 16 }
 0x24d   : > { %639 = vperm.xlu1 %2344, %v2736_v9   ;;  %v2808_v7 = vpop.permute.xlu1 %294  ;;  %vm824_vm4 = vcmp.lt.s32.totalorder %v2817_v20, 15  ;;  %vm929_vm5 = vcmp.lt.s32.totalorder %v2817_v20, 1  ;;  %vm1126_vm6 = vcmp.lt.s32.totalorder %v2817_v20, 127  ;;  %vm1231_vm7 = vcmp.lt.s32.totalorder %v2817_v20, 113 }
 0x24e   : > { %1650 = vmatmul.mubr.f32.gmra.mxu0 %v1566_v8  ;;  %1772 = vmatprep.mubr.f32.mxu1 %v1702_v2  ;;  %3965 = vst [vmem:[#allocation40_spill] sm:$0xff] %v2808_v7  ;;  %vm1336_vm8 = vcmp.lt.s32.totalorder %v2817_v20, 112  ;;  %vm1441_vm9 = vcmp.lt.s32.totalorder %v2817_v20, 111 }
 0x24f   : > { %1773 = vmatmul.mubr.f32.gmra.mxu1 %v1701_v12 }
 0x250   : > { %717 = vrot.lane.b32.xlu0 %v2722_v61, %s2465_s15 }
 0x251   : > { %711 = vrot.lane.b32.xlu1 %v2716_v54, %s2465_s15  ;;  %v2813_v19 = vpop.permute.xlu1 %299 }
 0x252   : > { %2345 = vset.pattern.permute.xlu1 %v3882_v6  ;;  %3966 = vst [vmem:[#allocation41_spill] sm:$0xff] %v2813_v19 }
 0x254   : > { %749 = vperm.xlu0 %2346, %v2748_v11  }
 0x255   : > { %715 = vrot.lane.b32.xlu1 %v2720_v58, %s2465_s15  ;;  %s2471_s15 = smov 127   ;;  %v2820_v21 = vpop.permute.xlu1 %309 }
 0x256   : > { %3967 = vst [vmem:[#allocation42_spill] sm:$0xff] %v2820_v21 }
 0x258   : > { %820 = vrot.lane.b32.xlu0 %v2720_v58, %s2466_s18 }
 0x259   : > { %745 = vperm.xlu1 %2345, %v2736_v9   ;;  %2347 = vset.pattern.permute.xlu0 %v2467_v13 }
 0x25c   : > { %850 = vperm.xlu0 %2347, %v2736_v9  }
 0x25d   : > { %816 = vrot.lane.b32.xlu1 %v2716_v54, %s2466_s18 }
 0x25e   : > { %2349 = vset.pattern.permute.xlu1 %v2467_v13 }
 0x260   : > { %2348 = vset.pattern.permute.xlu0 %v3884_v3 }
 0x261   : > { %818 = vrot.lane.b32.xlu1 %v2718_v57, %s2466_s18  ;;  %279 = vperm.xlu0 %2348, %v266_v15  }
 0x265   : > { %822 = vrot.lane.b32.xlu1 %v2722_v61, %s2466_s18  ;;  %304 = vperm.xlu0 %2348, %v271_v17   ;;  %s2477_s18 = smov 111   ;;  %v2826_v17 = vsub.s32 0, %v2567_v4 }
 0x269   : > { %854 = vperm.xlu1 %2349, %v2748_v11   ;;  %314 = vperm.xlu0 %2348, %v273_v5   ;;  %v2831_v5 = vld [vmem:[%s3880_s5 + $0x8] sm:$0xff] }
 0x26a   : > { %3968 = vst [vmem:[#allocation43_spill] sm:$0xff] %v2831_v5  ;;  %v836_v29 = vrot.slane %v2831_v5, %v831_v38 }
 0x26d   : > { %921 = vrot.lane.b32.xlu1 %v2716_v54, %s2468_s10  ;;  %644 = vperm.xlu0 %2348, %v2748_v11  }
 0x26e   : > { %2350 = vset.pattern.permute.xlu1 %v3884_v3 }
 0x271   : > { %925 = vrot.lane.b32.xlu1 %v2720_v58, %s2468_s10  ;;  %923 = vrot.lane.b32.xlu0 %v2718_v57, %s2468_s10 }
 0x275   : > { %1577 = vperm.xlu1 %2350, %v1569_v10   ;;  %1572 = vperm.xlu0 %2348, %v1568_v59   ;;  %v2836_v10 = vld [vmem:[%s3880_s5 + $0x10] sm:$0xff]  ;;  %v2844_v59 = vld [vmem:[%s3880_s5] sm:$0xff] }
 0x276   : > { %3969 = vst [vmem:[#allocation44_spill] sm:$0xff] %v2836_v10  ;;  %v840_v28 = vrot.slane %v2836_v10, %v831_v38 }
 0x279   : > { %927 = vrot.lane.b32.xlu1 %v2722_v61, %s2468_s10  ;;  %2351 = vset.pattern.permute.xlu0 %v2469_v60 }
 0x27a   : > { %955 = vperm.xlu0 %2351, %v2736_v9   ;;  %2352 = vset.pattern.permute.xlu1 %v2469_v60  ;;  %v2849_v60 = vld [vmem:[%s3880_s5 + $0x18] sm:$0xff] }
 0x27d   : > { %959 = vperm.xlu1 %2352, %v2748_v11  }
 0x27e   : > { %2354 = vset.pattern.permute.xlu0 %v2470_v1 }
 0x27f   : > { %1051 = vperm.xlu0 %2354, %v2748_v11  }
 0x281   : > { %2353 = vset.pattern.permute.xlu1 %v2470_v1  ;;  %v628_v1 = vrot.slane %v2836_v10, %v2826_v17 }
 0x282   : > { %1047 = vperm.xlu1 %2353, %v2736_v9  }
 0x283   : > { %1122 = vrot.lane.b32.xlu0 %v2720_v58, %s2471_s15 }
 0x284   : > { %2355 = vset.pattern.permute.xlu0 %v2472_v14 }
 0x286   : > { %1118 = vrot.lane.b32.xlu1 %v2716_v54, %s2471_s15 }
 0x287   : > { %1152 = vperm.xlu0 %2355, %v2736_v9   ;;  %2356 = vset.pattern.permute.xlu1 %v2472_v14  ;;  %v620_v14 = vrot.slane %v2844_v59, %v2826_v17 }
 0x28a   : > { %1120 = vrot.lane.b32.xlu1 %v2718_v57, %s2471_s15 }
 0x28b   : > { %1225 = vrot.lane.b32.xlu0 %v2718_v57, %s2473_s16 }
 0x28c   : > { %2358 = vset.pattern.permute.xlu0 %v2474_v16 }
 0x28e   : > { %1124 = vrot.lane.b32.xlu1 %v2722_v61, %s2471_s15  ;;  %s2403_s15 = sshll.u32 %s2479_s14, 4  ;;  %s2404_s15 = int_to_ptr.vmem [resolvable:$false] %s2403_s15 }
 0x28f   : > { %1229 = vrot.lane.b32.xlu0 %v2722_v61, %s2473_s16  ;;  %p2406_p0 = scmp.lt.s32.totalorder %s3830_s9, %s2404_s15 }
 0x292   : > { %1156 = vperm.xlu1 %2356, %v2748_v11  }
 0x293   : > { %1261 = vperm.xlu0 %2358, %v2748_v11  }
 0x296   : > { %1223 = vrot.lane.b32.xlu1 %v2716_v54, %s2473_s16 }
 0x297   : > { %1332 = vrot.lane.b32.xlu0 %v2720_v58, %s2475_s17  ;;  %2357 = vset.pattern.permute.xlu1 %v2474_v16  ;;  %v632_v16 = vrot.slane %v2849_v60, %v2826_v17 }
 0x298   : > { %2359 = vset.pattern.permute.xlu0 %v2476_v18 }
 0x29a   : > { %1227 = vrot.lane.b32.xlu1 %v2720_v58, %s2473_s16  ;;  %s2405_s16 = scalar_lea.vmem %s2404_s15, 1024 }
 0x29b   : > { %1362 = vperm.xlu0 %2359, %v2736_v9   ;;  %p2407_p1 = scmp.lt.s32.totalorder %s2405_s16, %s2399_s13 }
 0x29d   : > { %p2408_p2 = por %p2407_p1, %p2406_p0 }
 0x29e   : > { %1257 = vperm.xlu1 %2357, %v2736_v9  }
 0x29f   : > { %1435 = vrot.lane.b32.xlu0 %v2718_v57, %s2477_s18  ;;  %p2409_p3 = pnand %p2408_p2, %p2402_p13 }
 0x2a0   : > { %2362 = vset.pattern.permute.xlu0 %v2478_v62 }
 0x2a2   : > { %1328 = vrot.lane.b32.xlu1 %v2716_v54, %s2475_s17 }
 0x2a3   : > { %1439 = vrot.lane.b32.xlu0 %v2722_v61, %s2477_s18  ;;  %2360 = vset.pattern.permute.xlu1 %v2476_v18 }
 0x2a6   : > { %1330 = vrot.lane.b32.xlu1 %v2718_v57, %s2475_s17 }
 0x2a7   : > { %1471 = vperm.xlu0 %2362, %v2748_v11  }
 0x2aa   : > { %1334 = vrot.lane.b32.xlu1 %v2722_v61, %s2475_s17 }
 0x2ab   : > { %2364 = vset.pattern.permute.xlu0 %v3882_v6 }
 0x2ae   : > { %1366 = vperm.xlu1 %2360, %v2748_v11  }
 0x2b2   : > { %1433 = vrot.lane.b32.xlu1 %v2716_v54, %s2477_s18 }
 0x2b3   : > { %2361 = vset.pattern.permute.xlu1 %v2478_v62 }
 0x2b6   : > { %1437 = vrot.lane.b32.xlu1 %v2720_v58, %s2477_s18  ;;  %v605_v55 = vpop.permute.xlu0 %604 }
 0x2b7   : > { %v603_v8 = vpop.permute.xlu1 %602 }
 0x2b8   : > { %v615_v2 = vsel %vm612_vm2, %v603_v8, %v605_v55 }
 0x2ba   : > { %1467 = vperm.xlu1 %2361, %v2736_v9   ;;  %v609_v12 = vpop.permute.xlu0 %608  ;;  %v624_v9 = vrot.slane %v2831_v5, %v2826_v17 }
 0x2bb   : > { %v616_v13 = vsel %vm612_vm2, %v609_v12, %v603_v8  ;;  %v607_v11 = vpop.permute.xlu1 %606 }
 0x2bc   : > { %v613_v15 = vsel %vm612_vm2, %v607_v11, %v609_v12  ;;  %v614_v0 = vsel %vm612_vm2, %v605_v55, %v607_v11  ;;  %v634_v18 = vmul.f32 %v624_v9, %v615_v2  ;;  %v2858_v55 = vsub.s32 1, %v2567_v4 }
 0x2bd   : > { %v635_v62 = vmul.f32 %v628_v1, %v614_v0  ;;  %v633_v8 = vmul.f32 %v620_v14, %v616_v13  ;;  %v636_v12 = vmul.f32 %v632_v16, %v613_v15 }
 0x2be   : > { %2363 = vset.pattern.permute.xlu1 %v3884_v3  ;;  %v714_v11 = vpop.permute.xlu0 %713  ;;  %v727_v6 = vrot.slane %v2844_v59, %v2858_v55  ;;  %v731_v3 = vrot.slane %v2831_v5, %v2858_v55  ;;  %v2866_v56 = vrot.slane %v634_v18, %v2826_v17  ;;  %v2869_v2 = vrot.slane %v634_v18, %v2858_v55 }
 0x2bf   : > { %v2872_v0 = vrot.slane %v635_v62, %v2826_v17  ;;  %v2875_v13 = vrot.slane %v635_v62, %v2858_v55  ;;  %v2878_v15 = vrot.slane %v633_v8, %v2826_v17  ;;  %v2881_v9 = vrot.slane %v633_v8, %v2858_v55 }
 0x2c0   : > { %v2884_v1 = vrot.slane %v636_v12, %v2826_v17  ;;  %v2887_v14 = vrot.slane %v636_v12, %v2858_v55  ;;  %v735_v23 = vrot.slane %v2836_v10, %v2858_v55  ;;  %v739_v51 = vrot.slane %v2849_v60, %v2858_v55 }
 0x2c2   : > { %v718_v44 = vpop.permute.xlu0 %717 }
 0x2c8   : > { %v640_v16 = vpop.permute.xlu1 %639 }
 0x2c9   : > { %v664_v18 = vmul.f32 %v2866_v56, %v640_v16  ;;  %v665_v53 = vmul.f32 %v2872_v0, %v640_v16  ;;  %v696_v62 = vmul.f32 %v2869_v2, %v640_v16  ;;  %v697_v52 = vmul.f32 %v2875_v13, %v640_v16 }
 0x2ca   : > { %v663_v50 = vmul.f32 %v2878_v15, %v640_v16  ;;  %v666_v8 = vmul.f32 %v2884_v1, %v640_v16  ;;  %v695_v47 = vmul.f32 %v2881_v9, %v640_v16  ;;  %v698_v45 = vmul.f32 %v2887_v14, %v640_v16 }
 0x2cc   : > { %v712_v12 = vpop.permute.xlu1 %711 }
 0x2cd   : > { %v722_v42 = vsel %vm719_vm3, %v712_v12, %v714_v11  ;;  %v723_v27 = vsel %vm719_vm3, %v718_v44, %v712_v12 }
 0x2ce   : > { %v740_v25 = vmul.f32 %v727_v6, %v723_v27  ;;  %v741_v24 = vmul.f32 %v731_v3, %v722_v42 }
 0x2cf   : > { %v750_v49 = vpop.permute.xlu0 %749 }
 0x2d0   : > { %v755_v48 = vrot.slane %v740_v25, %v2826_v17  ;;  %v759_v16 = vrot.slane %v741_v24, %v2826_v17  ;;  %v787_v46 = vrot.slane %v740_v25, %v2858_v55  ;;  %v791_v21 = vrot.slane %v741_v24, %v2858_v55  ;;  %v716_v43 = vpop.permute.xlu1 %715 }
 0x2d1   : > { %v720_v27 = vsel %vm719_vm3, %v716_v43, %v718_v44  ;;  %v721_v3 = vsel %vm719_vm3, %v714_v11, %v716_v43 }
 0x2d2   : > { %v742_v42 = vmul.f32 %v735_v23, %v721_v3  ;;  %v743_v6 = vmul.f32 %v739_v51, %v720_v27  ;;  %v2913_v12 = vmul.f32 %v755_v48, %v750_v49  ;;  %v2915_v41 = vmul.f32 %v759_v16, %v750_v49 }
 0x2d3   : > { %v821_v40 = vpop.permute.xlu0 %820  ;;  %v2918_v19 = vmul.f32 %v787_v46, %v750_v49  ;;  %v2920_v25 = vmul.f32 %v791_v21, %v750_v49 }
 0x2d4   : > { %v763_v24 = vrot.slane %v742_v42, %v2826_v17  ;;  %v767_v44 = vrot.slane %v743_v6, %v2826_v17  ;;  %v795_v39 = vrot.slane %v742_v42, %v2858_v55  ;;  %v799_v23 = vrot.slane %v743_v6, %v2858_v55  ;;  %v746_v43 = vpop.permute.xlu1 %745 }
 0x2d5   : > { %v769_v51 = vmul.f32 %v759_v16, %v746_v43  ;;  %v801_v11 = vmul.f32 %v791_v21, %v746_v43  ;;  %v768_v27 = vmul.f32 %v755_v48, %v746_v43  ;;  %v800_v3 = vmul.f32 %v787_v46, %v746_v43 }
 0x2d6   : > { %v2926_v37 = vmul.f32 %v763_v24, %v750_v49  ;;  %v2928_v36 = vmul.f32 %v767_v44, %v750_v49  ;;  %v2930_v34 = vmul.f32 %v795_v39, %v750_v49  ;;  %v2932_v7 = vmul.f32 %v799_v23, %v750_v49 }
 0x2d7   : > { %v851_v35 = vpop.permute.xlu0 %850  ;;  %v770_v33 = vmul.f32 %v763_v24, %v746_v43  ;;  %v777_v32 = vadd.f32 %v769_v51, %v664_v18  ;;  %v802_v30 = vmul.f32 %v795_v39, %v746_v43  ;;  %v809_v42 = vadd.f32 %v801_v11, %v696_v62 }
 0x2d8   : > { %v817_v63 = vpop.permute.xlu1 %816  ;;  %v771_v6 = vmul.f32 %v767_v44, %v746_v43  ;;  %v776_v31 = vadd.f32 %v768_v27, %v663_v50  ;;  %v803_v16 = vmul.f32 %v799_v23, %v746_v43  ;;  %v808_v21 = vadd.f32 %v800_v3, %v695_v47 }
 0x2d9   : > { %v778_v48 = vadd.f32 %v770_v33, %v665_v53  ;;  %v810_v46 = vadd.f32 %v802_v30, %v697_v52  ;;  %v2944_v33 = vsub.s32 4, %v2567_v4  ;;  %v832_v52 = vrot.slane %v2844_v59, %v831_v38 }
 0x2da   : > { %v779_v49 = vadd.f32 %v771_v6, %v666_v8  ;;  %v811_v26 = vadd.f32 %v803_v16, %v698_v45  ;;  %v844_v53 = vrot.slane %v2849_v60, %v831_v38  ;;  %v2961_v38 = vsub.s32 3, %v2567_v4 }
 0x2db   : > { %v1029_v23 = vrot.slane %v2844_v59, %v2944_v33  ;;  %v1033_v16 = vrot.slane %v2831_v5, %v2944_v33 }
 0x2dc   : > { %v819_v22 = vpop.permute.xlu1 %818  ;;  %v2937_v24 = vpop.permute.xlu0 %279 }
 0x2dd   : > { %3970 = vst [vmem:[#allocation45_spill] sm:$0xff] %v2937_v24  ;;  %v826_v39 = vsel %vm824_vm4, %v819_v22, %v821_v40  ;;  %v827_v50 = vsel %vm824_vm4, %v817_v63, %v819_v22 }
 0x2de   : > { %v846_v30 = vmul.f32 %v836_v29, %v827_v50  ;;  %v847_v47 = vmul.f32 %v840_v28, %v826_v39 }
 0x2e0   : > { %v864_v45 = vrot.slane %v846_v30, %v2826_v17  ;;  %v868_v18 = vrot.slane %v847_v47, %v2826_v17  ;;  %v896_v62 = vrot.slane %v846_v30, %v2858_v55  ;;  %v2952_v8 = vrot.slane %v847_v47, %v2858_v55  ;;  %v823_v44 = vpop.permute.xlu1 %822  ;;  %v2954_v22 = vpop.permute.xlu0 %304 }
 0x2e1   : > { %3971 = vst [vmem:[#allocation46_spill] sm:$0xff] %v2954_v22  ;;  %v825_v29 = vsel %vm824_vm4, %v821_v40, %v823_v44  ;;  %v828_v28 = vsel %vm824_vm4, %v823_v44, %v817_v63  ;;  %v1037_v40 = vrot.slane %v2836_v10, %v2944_v33 }
 0x2e2   : > { %v874_v43 = vmul.f32 %v864_v45, %v851_v35  ;;  %v875_v51 = vmul.f32 %v868_v18, %v851_v35  ;;  %v906_v11 = vmul.f32 %v896_v62, %v851_v35  ;;  %v907_v27 = vmul.f32 %v2952_v8, %v851_v35 }
 0x2e3   : > { %v845_v3 = vmul.f32 %v832_v52, %v828_v28  ;;  %v848_v6 = vmul.f32 %v844_v53, %v825_v29 }
 0x2e4   : > { %v2970_v63 = vadd.f32 %v874_v43, %v777_v32  ;;  %v2972_v39 = vadd.f32 %v875_v51, %v778_v48  ;;  %v2974_v50 = vadd.f32 %v906_v11, %v809_v42  ;;  %v2976_v30 = vadd.f32 %v907_v27, %v810_v46  ;;  %v855_v47 = vpop.permute.xlu1 %854  ;;  %v2978_v44 = vpop.permute.xlu0 %314 }
 0x2e5   : > { %3975 = vst [vmem:[#allocation50_spill] sm:$0xff] %v2978_v44  ;;  %v860_v52 = vrot.slane %v845_v3, %v2826_v17  ;;  %v872_v53 = vrot.slane %v848_v6, %v2826_v17  ;;  %v892_v29 = vrot.slane %v845_v3, %v2858_v55  ;;  %v904_v28 = vrot.slane %v848_v6, %v2858_v55 }
 0x2e6   : > { %3972 = vst [vmem:[#allocation47_spill] sm:$0xff] %v2972_v39  ;;  %3973 = vst [vmem:[#allocation48_spill] sm:$0xff] %v2974_v50  ;;  %v941_v32 = vrot.slane %v2831_v5, %v2961_v38  ;;  %v945_v42 = vrot.slane %v2836_v10, %v2961_v38  ;;  %v1041_v48 = vrot.slane %v2849_v60, %v2944_v33 }
 0x2e7   : > { %3974 = vst [vmem:[#allocation49_spill] sm:$0xff] %v2976_v30  ;;  %v873_v46 = vmul.f32 %v860_v52, %v851_v35  ;;  %v876_v43 = vmul.f32 %v872_v53, %v851_v35  ;;  %v905_v51 = vmul.f32 %v892_v29, %v851_v35  ;;  %v908_v11 = vmul.f32 %v904_v28, %v851_v35 }
 0x2e8   : > { %v922_v27 = vpop.permute.xlu1 %921  ;;  %v645_v44 = vpop.permute.xlu0 %644  ;;  %v879_v3 = vmul.f32 %v868_v18, %v855_v47  ;;  %v880_v22 = vmul.f32 %v872_v53, %v855_v47  ;;  %v877_v6 = vmul.f32 %v860_v52, %v855_v47  ;;  %v878_v24 = vmul.f32 %v864_v45, %v855_v47 }
 0x2e9   : > { %v2991_v4 = vadd.f32 %v873_v46, %v776_v31  ;;  %v2993_v30 = vadd.f32 %v876_v43, %v779_v49  ;;  %v2995_v5 = vadd.f32 %v905_v51, %v808_v21  ;;  %v2997_v10 = vadd.f32 %v908_v11, %v811_v26 }
 0x2ea   : > { %v669_v33 = vmul.f32 %v2872_v0, %v645_v44  ;;  %v670_v39 = vmul.f32 %v2884_v1, %v645_v44  ;;  %v667_v35 = vmul.f32 %v2878_v15, %v645_v44  ;;  %v668_v50 = vmul.f32 %v2866_v56, %v645_v44 }
 0x2eb   : > { %v699_v18 = vmul.f32 %v2881_v9, %v645_v44  ;;  %v700_v45 = vmul.f32 %v2869_v2, %v645_v44  ;;  %v909_v31 = vmul.f32 %v892_v29, %v855_v47  ;;  %v910_v52 = vmul.f32 %v896_v62, %v855_v47 }
 0x2ec   : > { %v926_v49 = vpop.permute.xlu1 %925  ;;  %v924_v53 = vpop.permute.xlu0 %923  ;;  %v782_v21 = vadd.f32 %v2926_v37, %v669_v33  ;;  %v783_v26 = vadd.f32 %v2928_v36, %v670_v39  ;;  %v780_v0 = vadd.f32 %v2913_v12, %v667_v35  ;;  %v781_v1 = vadd.f32 %v2915_v41, %v668_v50 }
 0x2ed   : > { %v931_v15 = vsel %vm929_vm5, %v924_v53, %v926_v49  ;;  %v932_v56 = vsel %vm929_vm5, %v922_v27, %v924_v53  ;;  %v812_v2 = vadd.f32 %v2918_v19, %v699_v18  ;;  %v813_v9 = vadd.f32 %v2920_v25, %v700_v45 }
 0x2ee   : > { %v1042_v62 = vmul.f32 %v1029_v23, %v2716_v54  ;;  %v1043_v37 = vmul.f32 %v1033_v16, %v2718_v57  ;;  %v3017_v29 = vadd.f32 %v879_v3, %v782_v21  ;;  %v3019_v36 = vadd.f32 %v880_v22, %v783_v26 }
 0x2ef   : > { %v3021_v12 = vadd.f32 %v877_v6, %v780_v0  ;;  %v3023_v41 = vadd.f32 %v878_v24, %v781_v1  ;;  %v3025_v39 = vadd.f32 %v909_v31, %v812_v2  ;;  %v3027_v50 = vadd.f32 %v910_v52, %v813_v9  ;;  %v3977_v2 = vld [vmem:[#allocation47_spill] sm:$0xff] }
 0x2f0   : > { %v951_v46 = vmul.f32 %v941_v32, %v932_v56  ;;  %v952_v19 = vmul.f32 %v945_v42, %v931_v15  ;;  %v3029_v43 = vpop.permute.xlu1 %1577  ;;  %v3031_v25 = vpop.permute.xlu0 %1572  ;;  %v1044_v54 = vmul.f32 %v1037_v40, %v2720_v58  ;;  %v1045_v57 = vmul.f32 %v1041_v48, %v2722_v61  ;;  %v3976_v15 = vld [vmem:[#allocation48_spill] sm:$0xff] }
 0x2f1   : > { %v701_v22 = vmul.f32 %v2875_v13, %v645_v44  ;;  %v702_v23 = vmul.f32 %v2887_v14, %v645_v44  ;;  %v911_v24 = vmul.f32 %v2952_v8, %v855_v47  ;;  %v912_v16 = vmul.f32 %v904_v28, %v855_v47 }
 0x2f2   : > { %v937_v51 = vrot.slane %v2844_v59, %v2961_v38  ;;  %v949_v32 = vrot.slane %v2849_v60, %v2961_v38  ;;  %v3043_v42 = vrot.slane %v1042_v62, %v2826_v17  ;;  %v3046_v58 = vrot.slane %v1043_v37, %v2826_v17 }
 0x2f3   : > { %v3049_v61 = vrot.slane %v1042_v62, %v2858_v55  ;;  %v3052_v13 = vrot.slane %v1043_v37, %v2858_v55  ;;  %v814_v14 = vadd.f32 %v2930_v34, %v701_v22  ;;  %v815_v8 = vadd.f32 %v2932_v7, %v702_v23  ;;  %v3978_v62 = vld [vmem:[#allocation49_spill] sm:$0xff] }
 0x2f4   : > { %v969_v40 = vrot.slane %v951_v46, %v2826_v17  ;;  %v973_v38 = vrot.slane %v952_v19, %v2826_v17  ;;  %v1001_v47 = vrot.slane %v951_v46, %v2858_v55  ;;  %v1005_v44 = vrot.slane %v952_v19, %v2858_v55  ;;  %v928_v28 = vpop.permute.xlu1 %927 }
 0x2f5   : > { %v930_v48 = vsel %vm929_vm5, %v926_v49, %v928_v28  ;;  %v933_v11 = vsel %vm929_vm5, %v928_v28, %v922_v27  ;;  %v956_v3 = vpop.permute.xlu0 %955  ;;  %v919_v6 = vadd.f32 %v911_v24, %v814_v14  ;;  %v920_v34 = vadd.f32 %v912_v16, %v815_v8 }
 0x2f6   : > { %v950_v33 = vmul.f32 %v937_v51, %v933_v11  ;;  %v953_v7 = vmul.f32 %v949_v32, %v930_v48  ;;  %v979_v35 = vmul.f32 %v969_v40, %v956_v3  ;;  %v1011_v18 = vmul.f32 %v1001_v47, %v956_v3 }
 0x2f7   : > { %v980_v45 = vmul.f32 %v973_v38, %v956_v3  ;;  %v1012_v31 = vmul.f32 %v1005_v44, %v956_v3  ;;  %v3065_v52 = vrot.slane %v1044_v54, %v2826_v17  ;;  %v3068_v53 = vrot.slane %v1045_v57, %v2826_v17 }
 0x2f8   : > { %v965_v49 = vrot.slane %v950_v33, %v2826_v17  ;;  %v977_v21 = vrot.slane %v953_v7, %v2826_v17  ;;  %v997_v27 = vrot.slane %v950_v33, %v2858_v55  ;;  %v1009_v26 = vrot.slane %v953_v7, %v2858_v55  ;;  %v960_v0 = vpop.permute.xlu1 %959 }
 0x2f9   : > { %v987_v1 = vadd.f32 %v979_v35, %v2970_v63  ;;  %v1019_v56 = vadd.f32 %v1011_v18, %v3976_v15  ;;  %v988_v9 = vadd.f32 %v980_v45, %v3977_v2  ;;  %v1020_v37 = vadd.f32 %v1012_v31, %v3978_v62 }
 0x2fa   : > { %v978_v46 = vmul.f32 %v965_v49, %v956_v3  ;;  %v1010_v19 = vmul.f32 %v997_v27, %v956_v3  ;;  %v981_v22 = vmul.f32 %v977_v21, %v956_v3  ;;  %v1013_v23 = vmul.f32 %v1009_v26, %v956_v3 }
 0x2fb   : > { %v3079_v24 = vrot.slane %v1044_v54, %v2858_v55  ;;  %v3082_v16 = vrot.slane %v1045_v57, %v2858_v55  ;;  %v984_v51 = vmul.f32 %v973_v38, %v960_v0  ;;  %v985_v32 = vmul.f32 %v977_v21, %v960_v0 }
 0x2fc   : > { %v986_v63 = vadd.f32 %v978_v46, %v2991_v4  ;;  %v1018_v14 = vadd.f32 %v1010_v19, %v2995_v5  ;;  %v989_v8 = vadd.f32 %v981_v22, %v2993_v30  ;;  %v1021_v28 = vadd.f32 %v1013_v23, %v2997_v10 }
 0x2fd   : > { %v1048_v48 = vpop.permute.xlu1 %1047  ;;  %v3089_v11 = vadd.f32 %v984_v51, %v3017_v29  ;;  %v3092_v54 = vadd.f32 %v985_v32, %v3019_v36  ;;  %v982_v3 = vmul.f32 %v965_v49, %v960_v0  ;;  %v983_v57 = vmul.f32 %v969_v40, %v960_v0 }
 0x2fe   : > { %v1070_v38 = vmul.f32 %v3043_v42, %v1048_v48  ;;  %v1071_v33 = vmul.f32 %v3046_v58, %v1048_v48  ;;  %v1102_v4 = vmul.f32 %v3049_v61, %v1048_v48  ;;  %v1103_v5 = vmul.f32 %v3052_v13, %v1048_v48 }
 0x2ff   : > { %v1072_v30 = vmul.f32 %v3065_v52, %v1048_v48  ;;  %v1073_v10 = vmul.f32 %v3068_v53, %v1048_v48  ;;  %v1104_v29 = vmul.f32 %v3079_v24, %v1048_v48  ;;  %v1105_v7 = vmul.f32 %v3082_v16, %v1048_v48 }
 0x300   : > { %v3102_v36 = vadd.f32 %v1070_v38, %v986_v63  ;;  %v3104_v35 = vadd.f32 %v1071_v33, %v987_v1  ;;  %v3106_v40 = vadd.f32 %v1102_v4, %v1018_v14  ;;  %v3108_v18 = vadd.f32 %v1103_v5, %v1019_v56  ;;  %v3984_v33 = vld [vmem:[#allocation11_spill] sm:$0xff]  ;;  %v3986_v5 = vld [vmem:[#allocation12_spill] sm:$0xff] }
 0x301   : > { %v3110_v45 = vadd.f32 %v1072_v30, %v988_v9  ;;  %v3112_v31 = vadd.f32 %v1073_v10, %v989_v8  ;;  %v3114_v49 = vadd.f32 %v1104_v29, %v1020_v37  ;;  %v3116_v21 = vadd.f32 %v1105_v7, %v1021_v28  ;;  %v1119_v63 = vpop.permute.xlu1 %1118  ;;  %v3143_v28 = vpop.permute.xlu0 %1051  ;;  %v3988_v10 = vld [vmem:[#allocation14_spill] sm:$0xff] }
 0x302   : > { %v3119_v15 = vadd.f32 %v982_v3, %v3021_v12  ;;  %v3122_v2 = vadd.f32 %v983_v57, %v3023_v41  ;;  %v1014_v1 = vmul.f32 %v997_v27, %v960_v0  ;;  %v1015_v62 = vmul.f32 %v1001_v47, %v960_v0  ;;  %v3981_v57 = vld [vmem:[#allocation38_spill] sm:$0xff] }
 0x303   : > { %v1016_v46 = vmul.f32 %v1005_v44, %v960_v0  ;;  %v1017_v19 = vmul.f32 %v1009_v26, %v960_v0  ;;  %v3980_v0 = vmov 1   ;;  %v3153_v4 = vadd.f32 %v3984_v33, %v3981_v57 }
 0x304   : > { %v3125_v56 = vadd.f32 %v1014_v1, %v3025_v39  ;;  %v3128_v9 = vadd.f32 %v1015_v62, %v3027_v50  ;;  %v3157_v30 = vadd.f32 %v3986_v5, %v3981_v57  ;;  %v3161_v29 = vadd.f32 %v3988_v10, %v3981_v57  ;;  %v3990_v1 = vld [vmem:[#allocation39_spill] sm:$0xff]  ;;  %v3991_v62 = vld [vmem:[#allocation13_spill] sm:$0xff] }
 0x305   : > { %v3130_v37 = vadd.f32 %v1016_v46, %v919_v6  ;;  %v3132_v22 = vadd.f32 %v1017_v19, %v920_v34  ;;  %v3979_v6 = vmov 0   ;;  %v1121_v14 = vpop.permute.xlu1 %1120  ;;  %v1123_v3 = vpop.permute.xlu0 %1122  ;;  %3985 = vst [vmem:[#allocation47_spill] sm:$0xff] %v3153_v4  ;;  %v3167_v46 = vadd.f32 %v3991_v62, %v3990_v1  ;;  %v3993_v19 = vld [vmem:[#allocation15_spill] sm:$0xff]  ;;  %v4009_v5 = vld [vmem:[#allocation41_spill] sm:$0xff] }
 0x306   : > { %3987 = vst [vmem:[#allocation49_spill] sm:$0xff] %v3157_v30  ;;  %3989 = vst [vmem:[#allocation38_spill] sm:$0xff] %v3161_v29  ;;  %v4010_v10 = vld [vmem:[#allocation21_spill] sm:$0xff]  ;;  %v4012_v62 = vld [vmem:[#allocation23_spill] sm:$0xff] }
 0x309   : > { %v1769_v23 = vpop.f32.mrf.mxu1 }
 0x30a   : > { %v1646_v12 = vpop.f32.mrf.mxu0  ;;  %v1770_v39 = vadd.f32 %v1769_v23, %v3031_v25  ;;  %v3171_v23 = vadd.f32 %v3993_v19, %v3990_v1  ;;  %v3206_v19 = vadd.f32 %v4012_v62, %v4009_v5 }
 0x30b   : > { %v1771_v51 = vpop.f32.mrf.mxu1  ;;  %v1647_v41 = vadd.f32 %v1646_v12, %v3031_v25  ;;  %v1125_v25 = vpop.permute.xlu1 %1124  ;;  %v3995_v12 = vld [vmem:[#allocation16_spill] sm:$0xff] }
 0x30c   : > { %v1648_v32 = vpop.f32.mrf.mxu0  ;;  %3994 = vst [vmem:[#allocation11_spill] sm:$0xff] %v3171_v23  ;;  %v3175_v51 = vadd.f32 %v3995_v12, %v3990_v1 }
 0x30d   : > { %1666 = vperm.xlu0 %2364, %v1647_v41   ;;  %1657 = vperm.xlu1 %2363, %v1647_v41   ;;  %v3997_v41 = vld [vmem:[#allocation18_spill] sm:$0xff] }
 0x30e   : > { %v1651_v47 = vpop.f32.mrf.mxu0  ;;  %3996 = vst [vmem:[#allocation12_spill] sm:$0xff] %v3175_v51  ;;  %v3179_v32 = vadd.f32 %v3997_v41, %v3990_v1  ;;  %v3202_v1 = vadd.f32 %v4010_v10, %v4009_v5  ;;  %v4014_v41 = vld [vmem:[#allocation24_spill] sm:$0xff]  ;;  %v4019_v10 = vld [vmem:[#allocation29_spill] sm:$0xff] }
 0x30f   : > { %v1774_v27 = vpop.f32.mrf.mxu1  ;;  %v1652_v34 = vadd.f32 %v1651_v47, %v3029_v43  ;;  %v3141_v8 = vpop.permute.xlu1 %1156 }
 0x310   : > { %v1653_v44 = vpop.f32.mrf.mxu0  ;;  %v1775_v50 = vadd.f32 %v1774_v27, %v3029_v43  ;;  %v3982_v43 = vld [vmem:[#allocation9_spill] sm:$0xff]  ;;  %3998 = vst [vmem:[#allocation14_spill] sm:$0xff] %v3179_v32  ;;  %v3181_v47 = vpop.permute.xlu0 %1152  ;;  %4011 = vst [vmem:[#allocation18_spill] sm:$0xff] %v3202_v1  ;;  %v4030_v32 = vld [vmem:[#allocation6_spill] sm:$0xff] }
 0x311   : > { %v1776_v26 = vpop.f32.mrf.mxu1  ;;  %2366 = vset.pattern.permute.xlu0 %v3979_v6  ;;  %1780 = vperm.xlu1 %2363, %v1770_v39   ;;  %v3149_v38 = vadd.f32 %v3982_v43, %v3981_v57  ;;  %3992 = vst [vmem:[#allocation9_spill] sm:$0xff] %v3167_v46  ;;  %v3999_v44 = vld [vmem:[#allocation40_spill] sm:$0xff]  ;;  %v4000_v27 = vld [vmem:[#allocation17_spill] sm:$0xff]  ;;  %v4007_v43 = vld [vmem:[#allocation22_spill] sm:$0xff] }
 0x312   : > { %1785 = vperm.xlu0 %2366, %v1775_v50   ;;  %v4004_v6 = vld [vmem:[#allocation20_spill] sm:$0xff]  ;;  %v3198_v33 = vadd.f32 %v4007_v43, %v3999_v44  ;;  %4013 = vst [vmem:[#allocation40_spill] sm:$0xff] %v3206_v19  ;;  %v4018_v43 = vld [vmem:[#allocation42_spill] sm:$0xff]  ;;  %v1127_v19 = vsel %vm1126_vm6, %v1123_v3, %v1125_v25  ;;  %v4036_v1 = vld [vmem:[#allocation25_spill] sm:$0xff] }
 0x313   : > { %v3145_v48 = vpop.permute.xlu1 %1223  ;;  %3983 = vst [vmem:[#allocation48_spill] sm:$0xff] %v3149_v38  ;;  %v3225_v62 = vadd.f32 %v4019_v10, %v4018_v43 }
 0x314   : > { %4008 = vst [vmem:[#allocation16_spill] sm:$0xff] %v3198_v33 }
 0x315   : > { %1662 = vperm.xlu1 %2363, %v1652_v34   ;;  %4020 = vst [vmem:[#allocation20_spill] sm:$0xff] %v3225_v62 }
 0x316   : > { %2367 = vset.pattern.permute.xlu0 %v3980_v0 }
 0x317   : > { %v3163_v7 = vpop.permute.xlu1 %1227 }
 0x319   : > { %2365 = vset.pattern.permute.xlu1 %v3980_v0  ;;  %v4006_v0 = vld [vmem:[#allocation5_spill] sm:$0xff] }
 0x31a   : > { %1670 = vperm.xlu1 %2365, %v1652_v34   ;;  %v3193_v34 = vadd.f32 %v4004_v6, %v3999_v44  ;;  %v1133_v57 = vsub.s32 5, %v4006_v0  ;;  %v3209_v12 = vsub.s32 6, %v4006_v0 }
 0x31b   : > { %v3243_v30 = vpop.permute.xlu1 %1257 }
 0x31c   : > { %4005 = vst [vmem:[#allocation15_spill] sm:$0xff] %v3193_v34  ;;  %v1134_v38 = vrot.slane %v2844_v59, %v1133_v57  ;;  %v4028_v34 = vld [vmem:[#allocation44_spill] sm:$0xff]  ;;  %v1146_v10 = vrot.slane %v2849_v60, %v1133_v57 }
 0x31d   : > { %v1142_v29 = vrot.slane %v4028_v34, %v1133_v57 }
 0x31e   : > { %1789 = vperm.xlu1 %2365, %v1770_v39   ;;  %v3185_v39 = vadd.f32 %v4000_v27, %v3999_v44  ;;  %v3213_v27 = vadd.f32 %v4014_v41, %v4009_v5  ;;  %v4023_v41 = vld [vmem:[#allocation32_spill] sm:$0xff] }
 0x31f   : > { %v3233_v4 = vadd.f32 %v4023_v41, %v4018_v43  ;;  %v4033_v41 = vld [vmem:[#allocation10_spill] sm:$0xff] }
 0x320   : > { %4001 = vst [vmem:[#allocation39_spill] sm:$0xff] %v3185_v39  ;;  %4015 = vst [vmem:[#allocation17_spill] sm:$0xff] %v3213_v27  ;;  %v4029_v27 = vld [vmem:[#allocation45_spill] sm:$0xff] }
 0x321   : > { %4024 = vst [vmem:[#allocation22_spill] sm:$0xff] %v3233_v4  ;;  %v3282_v62 = vadd.f32 %v4033_v41, %v4029_v27  ;;  %v3306_v41 = vpop.permute.xlu1 %1328 }
 0x322   : > { %1793 = vperm.xlu1 %2365, %v1775_v50   ;;  %v4002_v50 = vld [vmem:[#allocation19_spill] sm:$0xff] }
 0x323   : > { %v3189_v26 = vadd.f32 %v4002_v50, %v3999_v44  ;;  %v4016_v50 = vld [vmem:[#allocation26_spill] sm:$0xff]  ;;  %v3221_v44 = vsub.s32 7, %v4006_v0  ;;  %v4027_v0 = vld [vmem:[#allocation43_spill] sm:$0xff]  ;;  %4034 = vst [vmem:[#allocation21_spill] sm:$0xff] %v3282_v62  ;;  %v4054_v62 = vrot.slane %v2844_v59, %v3209_v12 }
 0x324   : > { %v3217_v6 = vadd.f32 %v4016_v50, %v4009_v5  ;;  %v4025_v5 = vld [vmem:[#allocation34_spill] sm:$0xff]  ;;  %v1138_v33 = vrot.slane %v4027_v0, %v1133_v57  ;;  %v1128_v57 = vsel %vm1126_vm6, %v1121_v14, %v1123_v3 }
 0x325   : > { %4003 = vst [vmem:[#allocation13_spill] sm:$0xff] %v3189_v26  ;;  %v4021_v26 = vld [vmem:[#allocation31_spill] sm:$0xff]  ;;  %v3237_v50 = vadd.f32 %v4025_v5, %v4018_v43  ;;  %v4042_v3 = vld [vmem:[#allocation30_spill] sm:$0xff] }
 0x326   : > { %4017 = vst [vmem:[#allocation19_spill] sm:$0xff] %v3217_v6  ;;  %v3229_v39 = vadd.f32 %v4021_v26, %v4018_v43  ;;  %v1129_v26 = vsel %vm1126_vm6, %v1119_v63, %v1121_v14  ;;  %v3247_v6 = vpop.permute.xlu0 %1225  ;;  %v3266_v43 = vadd.f32 %v4030_v32, %v4029_v27  ;;  %v4031_v5 = vld [vmem:[#allocation7_spill] sm:$0xff] }
 0x327   : > { %4026 = vst [vmem:[#allocation41_spill] sm:$0xff] %v3237_v50  ;;  %v3270_v51 = vadd.f32 %v4031_v5, %v4029_v27  ;;  %v1147_v32 = vmul.f32 %v1134_v38, %v1129_v26  ;;  %v4035_v5 = vld [vmem:[#allocation46_spill] sm:$0xff]  ;;  %v4038_v14 = vld [vmem:[#allocation27_spill] sm:$0xff]  ;;  %v1076_v50 = vmul.f32 %v3065_v52, %v3143_v28 }
 0x328   : > { %4022 = vst [vmem:[#allocation5_spill] sm:$0xff] %v3229_v39  ;;  %v4032_v39 = vld [vmem:[#allocation8_spill] sm:$0xff]  ;;  %v3288_v23 = vadd.f32 %v4036_v1, %v4035_v5  ;;  %v3292_v46 = vadd.f32 %v4038_v14, %v4035_v5  ;;  %v3304_v26 = vadd.f32 %v4042_v3, %v4035_v5  ;;  %v1148_v1 = vmul.f32 %v1138_v33, %v1128_v57  ;;  %v4047_v52 = vld [vmem:[#allocation35_spill] sm:$0xff] }
 0x329   : > { %v3278_v4 = vadd.f32 %v4032_v39, %v4029_v27  ;;  %v1130_v39 = vsel %vm1126_vm6, %v1125_v25, %v1119_v63  ;;  %v4040_v27 = vld [vmem:[#allocation28_spill] sm:$0xff]  ;;  %v1077_v14 = vmul.f32 %v3068_v53, %v3143_v28  ;;  %v1162_v3 = vrot.slane %v1147_v32, %v2826_v17 }
 0x32a   : > { %4037 = vst [vmem:[#allocation23_spill] sm:$0xff] %v3288_v23  ;;  %4039 = vst [vmem:[#allocation24_spill] sm:$0xff] %v3292_v46  ;;  %v3300_v38 = vadd.f32 %v4040_v27, %v4035_v5  ;;  %v4044_v46 = vld [vmem:[#allocation50_spill] sm:$0xff]  ;;  %v4045_v23 = vld [vmem:[#allocation33_spill] sm:$0xff]  ;;  %v1149_v27 = vmul.f32 %v1142_v29, %v1127_v19  ;;  %v1074_v5 = vmul.f32 %v3043_v42, %v3143_v28 }
 0x32b   : > { %4043 = vst [vmem:[#allocation42_spill] sm:$0xff] %v3304_v26  ;;  %v3312_v63 = vadd.f32 %v4045_v23, %v4044_v46  ;;  %v3316_v25 = vadd.f32 %v4047_v52, %v4044_v46  ;;  %v4049_v33 = vld [vmem:[#allocation36_spill] sm:$0xff]  ;;  %v1150_v53 = vmul.f32 %v1146_v10, %v1130_v39  ;;  %v1075_v23 = vmul.f32 %v3046_v58, %v3143_v28 }
 0x32c   : > { %4041 = vst [vmem:[#allocation26_spill] sm:$0xff] %v3300_v38  ;;  %v1230_v38 = vpop.permute.xlu0 %1229  ;;  %v3322_v57 = vadd.f32 %v4049_v33, %v4044_v46  ;;  %v1084_v29 = vadd.f32 %v1076_v50, %v3089_v11  ;;  %v1106_v19 = vmul.f32 %v3049_v61, %v3143_v28  ;;  %v1107_v42 = vmul.f32 %v3052_v13, %v3143_v28 }
 0x32d   : > { %4046 = vst [vmem:[#allocation29_spill] sm:$0xff] %v3312_v63  ;;  %4048 = vst [vmem:[#allocation31_spill] sm:$0xff] %v3316_v25  ;;  %v4051_v63 = vld [vmem:[#allocation37_spill] sm:$0xff]  ;;  %v1166_v52 = vrot.slane %v1148_v1, %v2826_v17  ;;  %v1194_v33 = vrot.slane %v1147_v32, %v2858_v55  ;;  %v1198_v10 = vrot.slane %v1148_v1, %v2858_v55  ;;  %v1331_v1 = vpop.permute.xlu1 %1330 }
 0x32e   : > { %4050 = vst [vmem:[#allocation32_spill] sm:$0xff] %v3322_v57  ;;  %v3329_v26 = vadd.f32 %v4051_v63, %v4044_v46  ;;  %v1085_v58 = vadd.f32 %v1077_v14, %v3092_v54  ;;  %v1170_v39 = vrot.slane %v1149_v27, %v2826_v17  ;;  %v1082_v46 = vadd.f32 %v1074_v5, %v3119_v15 }
 0x32f   : > { %v1108_v11 = vmul.f32 %v3079_v24, %v3143_v28  ;;  %v1109_v61 = vmul.f32 %v3082_v16, %v3143_v28  ;;  %v1175_v13 = vmul.f32 %v1162_v3, %v3181_v47  ;;  %v1174_v50 = vrot.slane %v1150_v53, %v2826_v17 }
 0x330   : > { %4052 = vst [vmem:[#allocation34_spill] sm:$0xff] %v3329_v26  ;;  %v1202_v32 = vrot.slane %v1149_v27, %v2858_v55  ;;  %v1083_v54 = vadd.f32 %v1075_v23, %v3122_v2  ;;  %v1206_v14 = vrot.slane %v1150_v53, %v2858_v55  ;;  %v3352_v15 = vpop.permute.xlu0 %1261  ;;  %v1235_v24 = vsel %vm1231_vm7, %v1230_v38, %v3145_v48 }
 0x331   : > { %v1114_v16 = vadd.f32 %v1106_v19, %v3125_v56  ;;  %v1115_v28 = vadd.f32 %v1107_v42, %v3128_v9  ;;  %v1176_v63 = vmul.f32 %v1166_v52, %v3181_v47  ;;  %v1207_v27 = vmul.f32 %v1194_v33, %v3181_v47 }
 0x332   : > { %v1208_v5 = vmul.f32 %v1198_v10, %v3181_v47  ;;  %v1234_v2 = vsel %vm1231_vm7, %v3145_v48, %v3247_v6  ;;  %v1177_v53 = vmul.f32 %v1170_v39, %v3181_v47  ;;  %v1179_v23 = vmul.f32 %v1162_v3, %v3141_v8 }
 0x333   : > { %v1116_v25 = vadd.f32 %v1108_v11, %v3130_v37  ;;  %v1117_v56 = vadd.f32 %v1109_v61, %v3132_v22  ;;  %v1183_v9 = vadd.f32 %v1175_v13, %v3102_v36  ;;  %v1178_v19 = vmul.f32 %v1174_v50, %v3181_v47  ;;  %v1335_v13 = vpop.permute.xlu1 %1334 }
 0x334   : > { %v1209_v42 = vmul.f32 %v1202_v32, %v3181_v47  ;;  %v4053_v26 = vrot.slane %v2849_v60, %v3209_v12  ;;  %v1210_v48 = vmul.f32 %v1206_v14, %v3181_v47  ;;  %v1252_v3 = vmul.f32 %v4054_v62, %v1234_v2 }
 0x335   : > { %v1181_v37 = vmul.f32 %v1170_v39, %v3141_v8  ;;  %v1182_v22 = vmul.f32 %v1174_v50, %v3141_v8  ;;  %v3383_v36 = vadd.f32 %v1176_v63, %v3104_v35  ;;  %v1215_v11 = vadd.f32 %v1207_v27, %v3106_v40 }
 0x336   : > { %v1255_v57 = vmul.f32 %v4053_v26, %v1235_v24  ;;  %v3387_v61 = vadd.f32 %v1208_v5, %v3108_v18  ;;  %v1180_v26 = vmul.f32 %v1166_v52, %v3141_v8  ;;  %v3391_v47 = vadd.f32 %v1177_v53, %v3110_v45  ;;  %v1333_v24 = vpop.permute.xlu0 %1332 }
 0x337   : > { %v1232_v62 = vsel %vm1231_vm7, %v3163_v7, %v1230_v38  ;;  %v1187_v39 = vadd.f32 %v1179_v23, %v1082_v46  ;;  %v1211_v35 = vmul.f32 %v1194_v33, %v3141_v8  ;;  %v1186_v50 = vadd.f32 %v1178_v19, %v3112_v31 }
 0x338   : > { %v3399_v40 = vadd.f32 %v1209_v42, %v3114_v49  ;;  %v1279_v18 = vrot.slane %v1255_v57, %v2826_v17  ;;  %v1233_v45 = vsel %vm1231_vm7, %v3247_v6, %v3163_v7  ;;  %v3407_v52 = vadd.f32 %v1210_v48, %v3116_v21 }
 0x339   : > { %v1267_v38 = vrot.slane %v1252_v3, %v2826_v17  ;;  %v1189_v46 = vadd.f32 %v1181_v37, %v1084_v29  ;;  %v1190_v63 = vadd.f32 %v1182_v22, %v1085_v58  ;;  %v4055_v31 = vrot.slane %v4028_v34, %v3209_v12 }
 0x33a   : > { %v1188_v49 = vadd.f32 %v1180_v26, %v1083_v54  ;;  %v1212_v27 = vmul.f32 %v1198_v10, %v3141_v8  ;;  %v1213_v5 = vmul.f32 %v1202_v32, %v3141_v8  ;;  %v1299_v2 = vrot.slane %v1252_v3, %v2858_v55  ;;  %v3426_v54 = vpop.permute.xlu1 %1366 }
 0x33b   : > { %v1254_v33 = vmul.f32 %v4055_v31, %v1232_v62  ;;  %v4056_v7 = vrot.slane %v4027_v0, %v3209_v12  ;;  %v1339_v6 = vsel %vm1336_vm8, %v3306_v41, %v1331_v1  ;;  %v1219_v29 = vadd.f32 %v1211_v35, %v1114_v16  ;;  %v3430_v12 = vpop.permute.xlu0 %1362 }
 0x33c   : > { %v1287_v58 = vmul.f32 %v1279_v18, %v3352_v15  ;;  %v1311_v53 = vrot.slane %v1255_v57, %v2858_v55  ;;  %v1338_v10 = vsel %vm1336_vm8, %v1331_v1, %v1333_v24  ;;  %v1214_v32 = vmul.f32 %v1206_v14, %v3141_v8 }
 0x33d   : > { %v1253_v21 = vmul.f32 %v4056_v7, %v1233_v45  ;;  %v1284_v23 = vmul.f32 %v1267_v38, %v3352_v15  ;;  %v1312_v19 = vmul.f32 %v1299_v2, %v3243_v30  ;;  %v1280_v42 = vmul.f32 %v1267_v38, %v3243_v30 }
 0x33e   : > { %v1283_v16 = vmul.f32 %v1279_v18, %v3243_v30  ;;  %v1275_v48 = vrot.slane %v1254_v33, %v2826_v17  ;;  %v4057_v57 = vrot.slane %v2844_v59, %v3221_v44  ;;  %v1220_v3 = vadd.f32 %v1212_v27, %v1115_v28 }
 0x33f   : > { %v1221_v37 = vadd.f32 %v1213_v5, %v1116_v25  ;;  %v1316_v8 = vmul.f32 %v1299_v2, %v3352_v15  ;;  %v1271_v14 = vrot.slane %v1253_v21, %v2826_v17  ;;  %v1303_v22 = vrot.slane %v1253_v21, %v2858_v55 }
 0x340   : > { %v1357_v1 = vmul.f32 %v4057_v57, %v1339_v6  ;;  %v4058_v26 = vrot.slane %v4027_v0, %v3221_v44  ;;  %v1319_v35 = vmul.f32 %v1311_v53, %v3352_v15  ;;  %v1307_v18 = vrot.slane %v1254_v33, %v2858_v55 }
 0x341   : > { %v3448_v59 = vadd.f32 %v1287_v58, %v1190_v63  ;;  %v1222_v28 = vadd.f32 %v1214_v32, %v1117_v56  ;;  %v1320_v25 = vadd.f32 %v1312_v19, %v1215_v11  ;;  %v1288_v45 = vadd.f32 %v1280_v42, %v1183_v9  ;;  %v1434_v63 = vpop.permute.xlu1 %1433  ;;  %v1436_v11 = vpop.permute.xlu0 %1435 }
 0x342   : > { %v1358_v62 = vmul.f32 %v4058_v26, %v1338_v10  ;;  %v3450_v38 = vadd.f32 %v1283_v16, %v1186_v50  ;;  %v3452_v31 = vadd.f32 %v1284_v23, %v1187_v39  ;;  %v1286_v27 = vmul.f32 %v1275_v48, %v3352_v15 }
 0x343   : > { %v1404_v0 = vrot.slane %v1357_v1, %v2858_v55  ;;  %v1337_v5 = vsel %vm1336_vm8, %v1333_v24, %v1335_v13  ;;  %v1340_v33 = vsel %vm1336_vm8, %v1335_v13, %v3306_v41  ;;  %v1285_v56 = vmul.f32 %v1271_v14, %v3352_v15 }
 0x344   : > { %v1317_v9 = vmul.f32 %v1303_v22, %v3352_v15  ;;  %v1408_v39 = vrot.slane %v1358_v62, %v2858_v55  ;;  %v1313_v50 = vmul.f32 %v1303_v22, %v3243_v30  ;;  %v1318_v2 = vmul.f32 %v1307_v18, %v3352_v15 }
 0x345   : > { %v1281_v7 = vmul.f32 %v1271_v14, %v3243_v30  ;;  %v1282_v24 = vmul.f32 %v1275_v48, %v3243_v30  ;;  %v1314_v21 = vmul.f32 %v1307_v18, %v3243_v30  ;;  %v4059_v41 = vrot.slane %v4028_v34, %v3221_v44  ;;  %v1438_v14 = vpop.permute.xlu1 %1437 }
 0x346   : > { %v4060_v6 = vrot.slane %v2849_v60, %v3221_v44  ;;  %v3475_v10 = vadd.f32 %v1316_v8, %v1219_v29  ;;  %v1315_v32 = vmul.f32 %v1311_v53, %v3243_v30  ;;  %v1372_v15 = vrot.slane %v1357_v1, %v2826_v17  ;;  %v1440_v53 = vpop.permute.xlu0 %1439 }
 0x347   : > { %v1359_v13 = vmul.f32 %v4059_v41, %v1337_v5  ;;  %v1376_v23 = vrot.slane %v1358_v62, %v2826_v17  ;;  %v1417_v19 = vmul.f32 %v1404_v0, %v3430_v12  ;;  %v1294_v42 = vadd.f32 %v1286_v27, %v1189_v46 }
 0x348   : > { %v1360_v58 = vmul.f32 %v4060_v6, %v1340_v33  ;;  %v1418_v16 = vmul.f32 %v1408_v39, %v3430_v12  ;;  %v1321_v34 = vadd.f32 %v1313_v50, %v3387_v61  ;;  %v1293_v48 = vadd.f32 %v1285_v56, %v1188_v49 }
 0x349   : > { %v1325_v57 = vadd.f32 %v1317_v9, %v1220_v3  ;;  %v1289_v60 = vadd.f32 %v1281_v7, %v3383_v36  ;;  %v1290_v44 = vadd.f32 %v1282_v24, %v3391_v47  ;;  %v1322_v30 = vadd.f32 %v1314_v21, %v3399_v40  ;;  %v2279_v36 = vld [vmem:[%s3880_s5 + $0x38] ss:$0 sm:$0xff] }
 0x34a   : > { %v3486_v29 = vadd.f32 %v1318_v2, %v1221_v37  ;;  %v1380_v1 = vrot.slane %v1359_v13, %v2826_v17  ;;  %v1384_v46 = vrot.slane %v1360_v58, %v2826_v17  ;;  %v1323_v8 = vadd.f32 %v1315_v32, %v3407_v52  ;;  %v2277_v52 = vld [vmem:[%s3880_s5 + $0x28] ss:$0 sm:$0xff]  ;;  %v2278_v37 = vld [vmem:[%s3880_s5 + $0x30] ss:$0 sm:$0xff] }
 0x34b   : > { %v3491_v22 = vadd.f32 %v1319_v35, %v1222_v28  ;;  %v1385_v61 = vmul.f32 %v1372_v15, %v3430_v12  ;;  %v1386_v49 = vmul.f32 %v1376_v23, %v3430_v12  ;;  %v1445_v47 = vsel %vm1441_vm9, %v1440_v53, %v1434_v63  ;;  %v2276_v28 = vld [vmem:[%s3880_s5 + $0x20] ss:$0 sm:$0xff] }
 0x34c   : > { %v1425_v40 = vadd.f32 %v1417_v19, %v1320_v25  ;;  %v1412_v3 = vrot.slane %v1359_v13, %v2858_v55  ;;  %v1442_v26 = vsel %vm1441_vm9, %v1438_v14, %v1440_v53  ;;  %v1443_v62 = vsel %vm1441_vm9, %v1436_v11, %v1438_v14  ;;  %v1468_v14 = vpop.permute.xlu1 %1467 }
 0x34d   : > { %v1426_v35 = vadd.f32 %v1418_v16, %v1321_v34  ;;  %v1416_v18 = vrot.slane %v1360_v58, %v2858_v55  ;;  %v1444_v25 = vsel %vm1441_vm9, %v1434_v63, %v1436_v11  ;;  %v1389_v27 = vmul.f32 %v1372_v15, %v3426_v54 }
 0x34e   : > { %v1390_v5 = vmul.f32 %v1376_v23, %v3426_v54  ;;  %v1387_v33 = vmul.f32 %v1380_v1, %v3430_v12  ;;  %v1388_v56 = vmul.f32 %v1384_v46, %v3430_v12  ;;  %v1465_v9 = vmul.f32 %v2279_v36, %v1445_v47 }
 0x34f   : > { %v1391_v50 = vmul.f32 %v1380_v1, %v3426_v54  ;;  %v1463_v2 = vmul.f32 %v2277_v52, %v1443_v62  ;;  %v1464_v7 = vmul.f32 %v2278_v37, %v1442_v26  ;;  %v1393_v24 = vadd.f32 %v1385_v61, %v1288_v45 }
 0x350   : > { %v1392_v21 = vmul.f32 %v1384_v46, %v3426_v54  ;;  %v1462_v41 = vmul.f32 %v2276_v28, %v1444_v25  ;;  %v1394_v13 = vadd.f32 %v1386_v49, %v1289_v60  ;;  %v1421_v20 = vmul.f32 %v1404_v0, %v3426_v54 }
 0x351   : > { %v1422_v63 = vmul.f32 %v1408_v39, %v3426_v54  ;;  %v1419_v11 = vmul.f32 %v1412_v3, %v3430_v12  ;;  %v1420_v6 = vmul.f32 %v1416_v18, %v3430_v12  ;;  %v1397_v58 = vadd.f32 %v1389_v27, %v3452_v31  ;;  %v1472_v39 = vpop.permute.xlu0 %1471 }
 0x352   : > { %v1398_v32 = vadd.f32 %v1390_v5, %v1293_v48  ;;  %v1489_v15 = vrot.slane %v1465_v9, %v2826_v17  ;;  %v1395_v23 = vadd.f32 %v1387_v33, %v1290_v44  ;;  %v1396_v45 = vadd.f32 %v1388_v56, %v3450_v38 }
 0x353   : > { %v1399_v19 = vadd.f32 %v1391_v50, %v1294_v42  ;;  %v1481_v16 = vrot.slane %v1463_v2, %v2826_v17  ;;  %v1485_v34 = vrot.slane %v1464_v7, %v2826_v17  ;;  %v1513_v0 = vrot.slane %v1463_v2, %v2858_v55 }
 0x354   : > { %v1400_v60 = vadd.f32 %v1392_v21, %v3448_v59  ;;  %v1477_v12 = vrot.slane %v1462_v41, %v2826_v17  ;;  %v1509_v31 = vrot.slane %v1462_v41, %v2858_v55  ;;  %v1429_v48 = vadd.f32 %v1421_v20, %v3475_v10 }
 0x355   : > { %v1430_v44 = vadd.f32 %v1422_v63, %v1325_v57  ;;  %v1521_v38 = vrot.slane %v1465_v9, %v2858_v55  ;;  %v1427_v42 = vadd.f32 %v1419_v11, %v1322_v30  ;;  %v1423_v53 = vmul.f32 %v1412_v3, %v3426_v54 }
 0x356   : > { %v1424_v1 = vmul.f32 %v1416_v18, %v3426_v54  ;;  %v1522_v46 = vmul.f32 %v1509_v31, %v1468_v14  ;;  %v1490_v61 = vmul.f32 %v1477_v12, %v1468_v14  ;;  %v1497_v49 = vmul.f32 %v1489_v15, %v1472_v39 }
 0x357   : > { %v1428_v36 = vadd.f32 %v1420_v6, %v1323_v8  ;;  %v1523_v47 = vmul.f32 %v1513_v0, %v1468_v14  ;;  %v1491_v59 = vmul.f32 %v1481_v16, %v1468_v14  ;;  %v1492_v52 = vmul.f32 %v1485_v34, %v1468_v14  ;;  %v4061_v6 = vld [vmem:[#allocation9_spill] sm:$0xff] }
 0x358   : > { %v1493_v17 = vmul.f32 %v1489_v15, %v1468_v14  ;;  %v1517_v37 = vrot.slane %v1464_v7, %v2858_v55  ;;  %v1496_v26 = vmul.f32 %v1485_v34, %v1472_v39  ;;  %v1494_v10 = vmul.f32 %v1477_v12, %v1472_v39 }
 0x359   : > { %v1495_v57 = vmul.f32 %v1481_v16, %v1472_v39  ;;  %v1526_v62 = vmul.f32 %v1509_v31, %v1472_v39  ;;  %v1431_v30 = vadd.f32 %v1423_v53, %v3486_v29  ;;  %v1432_v3 = vadd.f32 %v1424_v1, %v3491_v22 }
 0x35a   : > { %v1529_v28 = vmul.f32 %v1521_v38, %v1472_v39  ;;  %v1530_v54 = vadd.f32 %v1522_v46, %v1425_v40  ;;  %v1498_v18 = vadd.f32 %v1490_v61, %v1393_v24  ;;  %v1505_v25 = vadd.f32 %v1497_v49, %v1400_v60  ;;  %v4065_v61 = vld [vmem:[#allocation20_spill] sm:$0xff] }
 0x35b   : > { %v1527_v27 = vmul.f32 %v1513_v0, %v1472_v39  ;;  %v1531_v8 = vadd.f32 %v1523_v47, %v1426_v35  ;;  %v1499_v5 = vadd.f32 %v1491_v59, %v1394_v13  ;;  %v1500_v33 = vadd.f32 %v1492_v52, %v1395_v23  ;;  %v4063_v23 = vld [vmem:[#allocation18_spill] sm:$0xff]  ;;  %v4066_v47 = vld [vmem:[#allocation5_spill] sm:$0xff] }
 0x35c   : > { %v1501_v56 = vadd.f32 %v1493_v17, %v1396_v45  ;;  %v1504_v50 = vadd.f32 %v1496_v26, %v1399_v19  ;;  %v3543_v55 = vadd.f32 %v1494_v10, %v1397_v58  ;;  %v3545_v2 = vadd.f32 %v1495_v57, %v1398_v32  ;;  %v4062_v32 = vld [vmem:[#allocation11_spill] sm:$0xff]  ;;  %v4064_v19 = vld [vmem:[#allocation40_spill] sm:$0xff] }
 0x35d   : > { %v1524_v7 = vmul.f32 %v1517_v37, %v1468_v14  ;;  %v3547_v22 = vadd.f32 %v1526_v62, %v1429_v48  ;;  %v1525_v40 = vmul.f32 %v1521_v38, %v1468_v14  ;;  %v3549_v63 = vadd.f32 %v1527_v27, %v1430_v44  ;;  %v4068_v10 = vld [vmem:[#allocation12_spill] sm:$0xff]  ;;  %v4069_v62 = vld [vmem:[#allocation14_spill] sm:$0xff] }
 0x35e   : > { %v1528_v35 = vmul.f32 %v1517_v37, %v1472_v39  ;;  %v3571_v0 = vadd.f32 %v1529_v28, %v1432_v3  ;;  %v4067_v37 = vld [vmem:[#allocation21_spill] sm:$0xff]  ;;  %v4072_v27 = vld [vmem:[#allocation22_spill] sm:$0xff] }
 0x35f   : > { %v3569_v34 = vadd.f32 %v1524_v7, %v1427_v42  ;;  %v3591_v42 = vadd.f32 %v1525_v40, %v1428_v36  ;;  %v4070_v28 = vld [vmem:[#allocation17_spill] sm:$0xff] }
 0x388   : > { %v1667_v9 = vpop.permute.xlu0 %1666  ;;  %v1658_v41 = vpop.permute.xlu1 %1657 }
 0x389   : > { %v1804_v21 = vadd.f32 %v1667_v9, %v1530_v54  ;;  %v1805_v29 = vadd.f32 %v1667_v9, %v1531_v8  ;;  %v1796_v24 = vadd.f32 %v1658_v41, %v1498_v18  ;;  %v1797_v20 = vadd.f32 %v1658_v41, %v1499_v5  ;;  %v4071_v18 = vld [vmem:[#allocation19_spill] sm:$0xff]  ;;  %v4073_v5 = vld [vmem:[#allocation41_spill] sm:$0xff]  ;;  %v4077_v41 = vld [vmem:[#allocation16_spill] sm:$0xff] }
 0x38b   : > { %v3552_v13 = vmul.f32 %v1804_v21, %v3266_v43  ;;  %v3555_v11 = vmul.f32 %v1805_v29, %v3270_v51  ;;  %v3558_v58 = vmul.f32 %v1804_v21, %v4061_v6  ;;  %v3561_v15 = vmul.f32 %v1805_v29, %v4062_v32 }
 0x38c   : > { %v3564_v45 = vmul.f32 %v1804_v21, %v4063_v23  ;;  %v3567_v16 = vmul.f32 %v1805_v29, %v4064_v19  ;;  %v3574_v39 = vmul.f32 %v1796_v24, %v3266_v43  ;;  %v3577_v14 = vmul.f32 %v1797_v20, %v3270_v51  ;;  %v1781_v31 = vpop.permute.xlu1 %1780 }
 0x38d   : > { %v3580_v60 = vmul.f32 %v1796_v24, %v4061_v6  ;;  %v3583_v12 = vmul.f32 %v1797_v20, %v4062_v32  ;;  %v1786_v48 = vpop.permute.xlu0 %1785  ;;  %v3586_v44 = vmul.f32 %v1796_v24, %v4063_v23  ;;  %v3589_v38 = vmul.f32 %v1797_v20, %v4064_v19  ;;  %v4080_v32 = vld [vmem:[#allocation32_spill] sm:$0xff]  ;;  %v4081_v19 = vld [vmem:[#allocation34_spill] sm:$0xff] }
 0x38e   : > { %v3593_v43 = vadd.f32 %v1528_v35, %v1431_v30  ;;  %v1798_v51 = vadd.f32 %v1781_v31, %v1500_v33  ;;  %v1799_v53 = vadd.f32 %v1781_v31, %v1501_v56  ;;  %v1802_v1 = vadd.f32 %v1786_v48, %v1504_v50  ;;  %v4074_v56 = vld [vmem:[#allocation49_spill] sm:$0xff]  ;;  %v4075_v50 = vld [vmem:[#allocation38_spill] sm:$0xff] }
 0x38f   : > { %v1803_v46 = vadd.f32 %v1786_v48, %v1505_v25  ;;  %v3596_v49 = vmul.f32 %v1804_v21, %v4065_v61  ;;  %v3599_v59 = vmul.f32 %v1805_v29, %v4066_v47  ;;  %v3602_v52 = vmul.f32 %v1796_v24, %v4065_v61  ;;  %v4076_v21 = vld [vmem:[#allocation15_spill] sm:$0xff]  ;;  %v4078_v24 = vld [vmem:[#allocation26_spill] sm:$0xff] }
 0x390   : > { %v3605_v17 = vmul.f32 %v1797_v20, %v4066_v47  ;;  %v1814_v36 = vmul.f32 %v1798_v51, %v3278_v4  ;;  %v1815_v26 = vmul.f32 %v1799_v53, %v4067_v37  ;;  %v1830_v57 = vmul.f32 %v1798_v51, %v4068_v10  ;;  %v3611_v3 = vpop.permute.xlu1 %1662  ;;  %v4079_v35 = vld [vmem:[#allocation42_spill] sm:$0xff] }
 0x391   : > { %v1831_v30 = vmul.f32 %v1799_v53, %v4069_v62  ;;  %v1846_v54 = vmul.f32 %v1798_v51, %v4070_v28  ;;  %v1847_v25 = vmul.f32 %v1799_v53, %v4071_v18  ;;  %v1862_v8 = vmul.f32 %v1798_v51, %v4072_v27 }
 0x392   : > { %v1863_v33 = vmul.f32 %v1799_v53, %v4073_v5  ;;  %v1818_v9 = vmul.f32 %v1802_v1, %v4074_v56  ;;  %v1819_v7 = vmul.f32 %v1803_v46, %v4075_v50  ;;  %v1834_v29 = vmul.f32 %v1802_v1, %v4076_v21 }
 0x393   : > { %v1835_v40 = vmul.f32 %v1803_v46, %v4077_v41  ;;  %v1850_v20 = vmul.f32 %v1802_v1, %v4078_v24  ;;  %v1851_v6 = vmul.f32 %v1803_v46, %v4079_v35  ;;  %v1866_v23 = vmul.f32 %v1802_v1, %v4080_v32 }
 0x394   : > { %v1867_v31 = vmul.f32 %v1803_v46, %v4081_v19  ;;  %v1890_v48 = vadd.f32 %v1818_v9, %v1814_v36  ;;  %v1897_v51 = vadd.f32 %v1819_v7, %v1815_v26  ;;  %v1946_v61 = vadd.f32 %v1834_v29, %v1830_v57 }
 0x395   : > { %v1953_v53 = vadd.f32 %v1835_v40, %v1831_v30  ;;  %v2002_v47 = vadd.f32 %v1850_v20, %v1846_v54  ;;  %v2009_v56 = vadd.f32 %v1851_v6, %v1847_v25  ;;  %v2058_v5 = vadd.f32 %v1866_v23, %v1862_v8  ;;  %v1671_v27 = vpop.permute.xlu1 %1670 }
 0x396   : > { %v2065_v50 = vadd.f32 %v1867_v31, %v1863_v33  ;;  %v1891_v21 = vrot.slane %v1890_v48, 4  ;;  %v1898_v18 = vrot.slane %v1897_v51, 4  ;;  %v1947_v41 = vrot.slane %v1946_v61, 4 }
 0x397   : > { %v1954_v28 = vrot.slane %v1953_v53, 4  ;;  %v2003_v24 = vrot.slane %v2002_v47, 4  ;;  %v2010_v62 = vrot.slane %v2009_v56, 4  ;;  %v2059_v35 = vrot.slane %v2058_v5, 4 }
 0x398   : > { %v2066_v10 = vrot.slane %v2065_v50, 4  ;;  %v1892_v1 = vadd.f32 %v1891_v21, %v1890_v48  ;;  %v1899_v32 = vadd.f32 %v1898_v18, %v1897_v51  ;;  %v1948_v46 = vadd.f32 %v1947_v41, %v1946_v61 }
 0x399   : > { %v1955_v36 = vadd.f32 %v1954_v28, %v1953_v53  ;;  %v2004_v26 = vadd.f32 %v2003_v24, %v2002_v47  ;;  %v2011_v57 = vadd.f32 %v2010_v62, %v2009_v56  ;;  %v2060_v30 = vadd.f32 %v2059_v35, %v2058_v5  ;;  %v1790_v7 = vpop.permute.xlu1 %1789 }
 0x39a   : > { %v2067_v54 = vadd.f32 %v2066_v10, %v2065_v50  ;;  %v1893_v25 = vrot.slane %v1892_v1, 2  ;;  %v1900_v8 = vrot.slane %v1899_v32, 2  ;;  %v1949_v33 = vrot.slane %v1948_v46, 2 }
 0x39b   : > { %v1956_v9 = vrot.slane %v1955_v36, 2  ;;  %v2005_v29 = vrot.slane %v2004_v26, 2  ;;  %v2012_v40 = vrot.slane %v2011_v57, 2  ;;  %v2061_v20 = vrot.slane %v2060_v30, 2 }
 0x39c   : > { %v2068_v6 = vrot.slane %v2067_v54, 2  ;;  %v1894_v23 = vadd.f32 %v1893_v25, %v1892_v1  ;;  %v1901_v31 = vadd.f32 %v1900_v8, %v1899_v32  ;;  %v1950_v19 = vadd.f32 %v1949_v33, %v1948_v46 }
 0x39d   : > { %v1957_v21 = vadd.f32 %v1956_v9, %v1955_v36  ;;  %v2006_v18 = vadd.f32 %v2005_v29, %v2004_v26  ;;  %v2013_v41 = vadd.f32 %v2012_v40, %v2011_v57  ;;  %v2062_v28 = vadd.f32 %v2061_v20, %v2060_v30  ;;  %v1794_v1 = vpop.permute.xlu1 %1793  ;;  %v4086_v29 = vld [vmem:[#allocation48_spill] sm:$0xff]  ;;  %v4088_v40 = vld [vmem:[#allocation39_spill] sm:$0xff] }
 0x39e   : > { %v2069_v24 = vadd.f32 %v2068_v6, %v2067_v54  ;;  %v1895_v62 = vrot.slane %v1894_v23, 1  ;;  %v1902_v5 = vrot.slane %v1901_v31, 1  ;;  %v1951_v10 = vrot.slane %v1950_v19, 1  ;;  %v4090_v6 = vld [vmem:[#allocation23_spill] sm:$0xff] }
 0x39f   : > { %v1958_v56 = vrot.slane %v1957_v21, 1  ;;  %v2007_v50 = vrot.slane %v2006_v18, 1  ;;  %v2014_v35 = vrot.slane %v2013_v41, 1  ;;  %v2063_v48 = vrot.slane %v2062_v28, 1 }
 0x3a0   : > { %v2070_v51 = vrot.slane %v2069_v24, 1  ;;  %v3625_v61 = vadd.f32 %v1895_v62, %v1894_v23  ;;  %v3627_v53 = vadd.f32 %v1902_v5, %v1901_v31  ;;  %v3629_v47 = vadd.f32 %v1951_v10, %v1950_v19  ;;  %v4091_v23 = vld [vmem:[#allocation24_spill] sm:$0xff] }
 0x3a1   : > { %v3631_v32 = vadd.f32 %v1958_v56, %v1957_v21  ;;  %v3633_v46 = vadd.f32 %v2007_v50, %v2006_v18  ;;  %v3635_v36 = vadd.f32 %v2014_v35, %v2013_v41  ;;  %v3637_v26 = vadd.f32 %v2063_v48, %v2062_v28  ;;  %v4093_v21 = vld [vmem:[#allocation31_spill] sm:$0xff] }
 0x3a2   : > { %v3639_v57 = vadd.f32 %v2070_v51, %v2069_v24  ;;  %v1800_v30 = vadd.f32 %v3611_v3, %v3543_v55  ;;  %v1801_v54 = vadd.f32 %v3611_v3, %v3545_v2  ;;  %v3646_v19 = vadd.f32 %v1671_v27, %v3547_v22  ;;  %v4087_v3 = vld [vmem:[#allocation47_spill] sm:$0xff] }
 0x3a3   : > { %4082 = vst [vmem:[#allocation43_spill] sm:$0xff] %v3633_v46  ;;  %4083 = vst [vmem:[#allocation44_spill] sm:$0xff] %v3635_v36  ;;  %v3649_v25 = vadd.f32 %v1671_v27, %v3549_v63  ;;  %v3652_v8 = vadd.f32 %v1790_v7, %v3569_v34  ;;  %v3655_v33 = vadd.f32 %v1790_v7, %v3591_v42  ;;  %v4089_v63 = vld [vmem:[#allocation13_spill] sm:$0xff] }
 0x3a4   : > { %4084 = vst [vmem:[#allocation45_spill] sm:$0xff] %v3637_v26  ;;  %4085 = vst [vmem:[#allocation6_spill] sm:$0xff] %v3639_v57  ;;  %v3658_v9 = vadd.f32 %v1794_v1, %v3593_v43  ;;  %v3661_v55 = vadd.f32 %v1794_v1, %v3571_v0  ;;  %v1816_v2 = vmul.f32 %v1800_v30, %v4086_v29  ;;  %v4092_v42 = vld [vmem:[#allocation29_spill] sm:$0xff] }
 0x3a5   : > { %v1817_v22 = vmul.f32 %v1801_v54, %v4087_v3  ;;  %v1832_v20 = vmul.f32 %v1800_v30, %v4088_v40  ;;  %v1833_v27 = vmul.f32 %v1801_v54, %v4089_v63  ;;  %v1848_v34 = vmul.f32 %v1800_v30, %v4090_v6 }
 0x3a6   : > { %v1849_v31 = vmul.f32 %v1801_v54, %v4091_v23  ;;  %v1864_v7 = vmul.f32 %v1800_v30, %v4092_v42  ;;  %v1865_v43 = vmul.f32 %v1801_v54, %v4093_v21  ;;  %v1876_v18 = vadd.f32 %v1816_v2, %v3574_v39 }
 0x3a7   : > { %v1883_v0 = vadd.f32 %v1817_v22, %v3577_v14  ;;  %v1932_v41 = vadd.f32 %v1832_v20, %v3580_v60  ;;  %v1939_v28 = vadd.f32 %v1833_v27, %v3583_v12  ;;  %v1988_v24 = vadd.f32 %v1848_v34, %v3586_v44 }
 0x3a8   : > { %v1995_v62 = vadd.f32 %v1849_v31, %v3589_v38  ;;  %v2044_v5 = vadd.f32 %v1864_v7, %v3602_v52  ;;  %v2051_v10 = vadd.f32 %v1865_v43, %v3605_v17  ;;  %v1877_v56 = vrot.slane %v1876_v18, 4 }
 0x3a9   : > { %v1884_v50 = vrot.slane %v1883_v0, 4  ;;  %v1933_v35 = vrot.slane %v1932_v41, 4  ;;  %v1940_v48 = vrot.slane %v1939_v28, 4  ;;  %v1989_v51 = vrot.slane %v1988_v24, 4 }
 0x3aa   : > { %v1996_v39 = vrot.slane %v1995_v62, 4  ;;  %v2045_v1 = vrot.slane %v2044_v5, 4  ;;  %v2052_v14 = vrot.slane %v2051_v10, 4  ;;  %v1878_v30 = vadd.f32 %v1877_v56, %v1876_v18 }
 0x3ab   : > { %v1885_v60 = vadd.f32 %v1884_v50, %v1883_v0  ;;  %v1934_v54 = vadd.f32 %v1933_v35, %v1932_v41  ;;  %v1941_v12 = vadd.f32 %v1940_v48, %v1939_v28  ;;  %v1990_v2 = vadd.f32 %v1989_v51, %v1988_v24 }
 0x3ac   : > { %v1997_v44 = vadd.f32 %v1996_v39, %v1995_v62  ;;  %v2046_v22 = vadd.f32 %v2045_v1, %v2044_v5  ;;  %v2053_v38 = vadd.f32 %v2052_v14, %v2051_v10  ;;  %v1879_v20 = vrot.slane %v1878_v30, 2 }
 0x3ad   : > { %v1886_v52 = vrot.slane %v1885_v60, 2  ;;  %v1935_v27 = vrot.slane %v1934_v54, 2  ;;  %v1942_v17 = vrot.slane %v1941_v12, 2  ;;  %v1991_v34 = vrot.slane %v1990_v2, 2 }
 0x3ae   : > { %v1998_v31 = vrot.slane %v1997_v44, 2  ;;  %v2047_v7 = vrot.slane %v2046_v22, 2  ;;  %v2054_v43 = vrot.slane %v2053_v38, 2  ;;  %v1880_v57 = vadd.f32 %v1879_v20, %v1878_v30 }
 0x3af   : > { %v1887_v26 = vadd.f32 %v1886_v52, %v1885_v60  ;;  %v1936_v36 = vadd.f32 %v1935_v27, %v1934_v54  ;;  %v1943_v46 = vadd.f32 %v1942_v17, %v1941_v12  ;;  %v1992_v18 = vadd.f32 %v1991_v34, %v1990_v2 }
 0x3b0   : > { %v1999_v0 = vadd.f32 %v1998_v31, %v1997_v44  ;;  %v2048_v41 = vadd.f32 %v2047_v7, %v2046_v22  ;;  %v2055_v28 = vadd.f32 %v2054_v43, %v2053_v38  ;;  %v1881_v24 = vrot.slane %v1880_v57, 1 }
 0x3b1   : > { %v1888_v62 = vrot.slane %v1887_v26, 1  ;;  %v1937_v5 = vrot.slane %v1936_v36, 1  ;;  %v1944_v10 = vrot.slane %v1943_v46, 1  ;;  %v1993_v56 = vrot.slane %v1992_v18, 1 }
 0x3b2   : > { %v2000_v50 = vrot.slane %v1999_v0, 1  ;;  %v2049_v35 = vrot.slane %v2048_v41, 1  ;;  %v2056_v48 = vrot.slane %v2055_v28, 1  ;;  %v3679_v51 = vadd.f32 %v1881_v24, %v1880_v57 }
 0x3b3   : > { %v3681_v39 = vadd.f32 %v1888_v62, %v1887_v26  ;;  %v3683_v1 = vadd.f32 %v1937_v5, %v1936_v36  ;;  %v3685_v14 = vadd.f32 %v1944_v10, %v1943_v46  ;;  %v3687_v30 = vadd.f32 %v1993_v56, %v1992_v18 }
 0x3b4   : > { %v3689_v60 = vadd.f32 %v2000_v50, %v1999_v0  ;;  %v3691_v54 = vadd.f32 %v2049_v35, %v2048_v41  ;;  %v3693_v12 = vadd.f32 %v2056_v48, %v2055_v28  ;;  %v1824_v2 = vmul.f32 %v3646_v19, %v4086_v29 }
 0x3b5   : > { %v1825_v57 = vmul.f32 %v3649_v25, %v4087_v3  ;;  %v1840_v36 = vmul.f32 %v3646_v19, %v4088_v40  ;;  %v1841_v46 = vmul.f32 %v3649_v25, %v4089_v63  ;;  %v1856_v26 = vmul.f32 %v3646_v19, %v4090_v6 }
 0x3b6   : > { %v1857_v44 = vmul.f32 %v3649_v25, %v4091_v23  ;;  %v1872_v22 = vmul.f32 %v3646_v19, %v4092_v42  ;;  %v1873_v29 = vmul.f32 %v3649_v25, %v4093_v21  ;;  %v1904_v3 = vadd.f32 %v1824_v2, %v3552_v13 }
 0x3b7   : > { %v1911_v38 = vadd.f32 %v1825_v57, %v3555_v11  ;;  %v1960_v40 = vadd.f32 %v1840_v36, %v3558_v58  ;;  %v1967_v63 = vadd.f32 %v1841_v46, %v3561_v15  ;;  %v2016_v20 = vadd.f32 %v1856_v26, %v3564_v45 }
 0x3b8   : > { %v2023_v6 = vadd.f32 %v1857_v44, %v3567_v16  ;;  %v2072_v23 = vadd.f32 %v1872_v22, %v3596_v49  ;;  %v2079_v52 = vadd.f32 %v1873_v29, %v3599_v59  ;;  %v1905_v19 = vrot.slane %v1904_v3, 4 }
 0x3b9   : > { %v1912_v42 = vrot.slane %v1911_v38, 4  ;;  %v1961_v27 = vrot.slane %v1960_v40, 4  ;;  %v1968_v25 = vrot.slane %v1967_v63, 4  ;;  %v2017_v13 = vrot.slane %v2016_v20, 4 }
 0x3ba   : > { %v2024_v21 = vrot.slane %v2023_v6, 4  ;;  %v2073_v11 = vrot.slane %v2072_v23, 4  ;;  %v2080_v17 = vrot.slane %v2079_v52, 4  ;;  %v1906_v58 = vadd.f32 %v1905_v19, %v1904_v3 }
 0x3bb   : > { %v1913_v34 = vadd.f32 %v1912_v42, %v1911_v38  ;;  %v1962_v15 = vadd.f32 %v1961_v27, %v1960_v40  ;;  %v1969_v31 = vadd.f32 %v1968_v25, %v1967_v63  ;;  %v2018_v45 = vadd.f32 %v2017_v13, %v2016_v20  ;;  %v4094_v13 = vld [vmem:[#allocation12_spill] sm:$0xff] }
 0x3bc   : > { %v2025_v7 = vadd.f32 %v2024_v21, %v2023_v6  ;;  %v2074_v16 = vadd.f32 %v2073_v11, %v2072_v23  ;;  %v2081_v43 = vadd.f32 %v2080_v17, %v2079_v52  ;;  %v1907_v49 = vrot.slane %v1906_v58, 2  ;;  %v4095_v11 = vld [vmem:[#allocation14_spill] sm:$0xff] }
 0x3bd   : > { %v1914_v18 = vrot.slane %v1913_v34, 2  ;;  %v1963_v59 = vrot.slane %v1962_v15, 2  ;;  %v1970_v0 = vrot.slane %v1969_v31, 2  ;;  %v2019_v41 = vrot.slane %v2018_v45, 2 }
 0x3be   : > { %v2026_v28 = vrot.slane %v2025_v7, 2  ;;  %v2075_v24 = vrot.slane %v2074_v16, 2  ;;  %v2082_v62 = vrot.slane %v2081_v43, 2  ;;  %v1908_v5 = vadd.f32 %v1907_v49, %v1906_v58  ;;  %v4096_v58 = vld [vmem:[#allocation17_spill] sm:$0xff]  ;;  %v4102_v49 = vld [vmem:[#allocation15_spill] sm:$0xff] }
 0x3bf   : > { %v1915_v10 = vadd.f32 %v1914_v18, %v1913_v34  ;;  %v1964_v56 = vadd.f32 %v1963_v59, %v1962_v15  ;;  %v1971_v50 = vadd.f32 %v1970_v0, %v1969_v31  ;;  %v2020_v35 = vadd.f32 %v2019_v41, %v2018_v45  ;;  %v4097_v34 = vld [vmem:[#allocation19_spill] sm:$0xff]  ;;  %v4098_v15 = vld [vmem:[#allocation22_spill] sm:$0xff]  ;;  %v4099_v31 = vld [vmem:[#allocation41_spill] sm:$0xff] }
 0x3c0   : > { %v2027_v48 = vadd.f32 %v2026_v28, %v2025_v7  ;;  %v3719_v2 = vadd.f32 %v2075_v24, %v2074_v16  ;;  %v3721_v57 = vadd.f32 %v2082_v62, %v2081_v43  ;;  %v1909_v36 = vrot.slane %v1908_v5, 1  ;;  %v4101_v16 = vld [vmem:[#allocation38_spill] sm:$0xff]  ;;  %v4103_v59 = vld [vmem:[#allocation16_spill] sm:$0xff] }
 0x3c1   : > { %v1916_v46 = vrot.slane %v1915_v10, 1  ;;  %v1965_v26 = vrot.slane %v1964_v56, 1  ;;  %v1972_v44 = vrot.slane %v1971_v50, 1  ;;  %v2021_v22 = vrot.slane %v2020_v35, 1  ;;  %v4104_v41 = vld [vmem:[#allocation26_spill] sm:$0xff]  ;;  %v4106_v62 = vld [vmem:[#allocation32_spill] sm:$0xff] }
 0x3c2   : > { %v2028_v29 = vrot.slane %v2027_v48, 1  ;;  %v2077_v3 = vrot.slane %v3719_v2, 1  ;;  %v2084_v38 = vrot.slane %v3721_v57, 1  ;;  %v1910_v40 = vadd.f32 %v1909_v36, %v1908_v5  ;;  %v4105_v24 = vld [vmem:[#allocation42_spill] sm:$0xff] }
 0x3c3   : > { %v1917_v63 = vadd.f32 %v1916_v46, %v1915_v10  ;;  %v3725_v20 = vadd.f32 %v1965_v26, %v1964_v56  ;;  %v3727_v6 = vadd.f32 %v1972_v44, %v1971_v50  ;;  %v3729_v23 = vadd.f32 %v2021_v22, %v2020_v35  ;;  %v4107_v5 = vld [vmem:[#allocation34_spill] sm:$0xff] }
 0x3c4   : > { %v3731_v52 = vadd.f32 %v2028_v29, %v2027_v48  ;;  %v1822_v19 = vmul.f32 %v3652_v8, %v3278_v4  ;;  %v1823_v42 = vmul.f32 %v3655_v33, %v4067_v37  ;;  %v3739_v27 = vsel %vm2132_vm10, %v1910_v40, %v3679_v51 }
 0x3c5   : > { %v3743_v25 = vsel %vm2132_vm10, %v1917_v63, %v3681_v39  ;;  %v1838_v21 = vmul.f32 %v3652_v8, %v4094_v13  ;;  %v1839_v17 = vmul.f32 %v3655_v33, %v4095_v11  ;;  %v1854_v4 = vmul.f32 %v3652_v8, %v4096_v58  ;;  %v4100_v39 = vld [vmem:[#allocation49_spill] sm:$0xff] }
 0x3c6   : > { %v1855_v37 = vmul.f32 %v3655_v33, %v4097_v34  ;;  %v1870_v51 = vmul.f32 %v3652_v8, %v4098_v15  ;;  %v1871_v45 = vmul.f32 %v3655_v33, %v4099_v31  ;;  %v1826_v7 = vmul.f32 %v3658_v9, %v4100_v39 }
 0x3c7   : > { %v1827_v43 = vmul.f32 %v3661_v55, %v4101_v16  ;;  %v1842_v18 = vmul.f32 %v3658_v9, %v4102_v49  ;;  %v1843_v0 = vmul.f32 %v3661_v55, %v4103_v59  ;;  %v1858_v28 = vmul.f32 %v3658_v9, %v4104_v41 }
 0x3c8   : > { %v1859_v8 = vmul.f32 %v3661_v55, %v4105_v24  ;;  %v1874_v33 = vmul.f32 %v3658_v9, %v4106_v62  ;;  %v1875_v10 = vmul.f32 %v3661_v55, %v4107_v5  ;;  %v1918_v56 = vadd.f32 %v1826_v7, %v1822_v19 }
 0x3c9   : > { %v1925_v50 = vadd.f32 %v1827_v43, %v1823_v42  ;;  %v1974_v35 = vadd.f32 %v1842_v18, %v1838_v21  ;;  %v1981_v48 = vadd.f32 %v1843_v0, %v1839_v17  ;;  %v2030_v36 = vadd.f32 %v1858_v28, %v1854_v4 }
 0x3ca   : > { %v2037_v46 = vadd.f32 %v1859_v8, %v1855_v37  ;;  %v2086_v26 = vadd.f32 %v1874_v33, %v1870_v51  ;;  %v2093_v44 = vadd.f32 %v1875_v10, %v1871_v45  ;;  %v1919_v22 = vrot.slane %v1918_v56, 4 }
 0x3cb   : > { %v1926_v29 = vrot.slane %v1925_v50, 4  ;;  %v1975_v40 = vrot.slane %v1974_v35, 4  ;;  %v1982_v63 = vrot.slane %v1981_v48, 4  ;;  %v2031_v13 = vrot.slane %v2030_v36, 4 }
 0x3cc   : > { %v2038_v11 = vrot.slane %v2037_v46, 4  ;;  %v2087_v58 = vrot.slane %v2086_v26, 4  ;;  %v2094_v34 = vrot.slane %v2093_v44, 4  ;;  %v1920_v9 = vadd.f32 %v1919_v22, %v1918_v56 }
 0x3cd   : > { %v1927_v15 = vadd.f32 %v1926_v29, %v1925_v50  ;;  %v1976_v55 = vadd.f32 %v1975_v40, %v1974_v35  ;;  %v1983_v19 = vadd.f32 %v1982_v63, %v1981_v48  ;;  %v2032_v42 = vadd.f32 %v2031_v13, %v2030_v36 }
 0x3ce   : > { %v2039_v21 = vadd.f32 %v2038_v11, %v2037_v46  ;;  %v2088_v17 = vadd.f32 %v2087_v58, %v2086_v26  ;;  %v2095_v4 = vadd.f32 %v2094_v34, %v2093_v44  ;;  %v1921_v37 = vrot.slane %v1920_v9, 2 }
 0x3cf   : > { %v1928_v51 = vrot.slane %v1927_v15, 2  ;;  %v1977_v31 = vrot.slane %v1976_v55, 2  ;;  %v1984_v45 = vrot.slane %v1983_v19, 2  ;;  %v2033_v39 = vrot.slane %v2032_v42, 2 }
 0x3d0   : > { %v2040_v7 = vrot.slane %v2039_v21, 2  ;;  %v2089_v16 = vrot.slane %v2088_v17, 2  ;;  %v2096_v43 = vrot.slane %v2095_v4, 2  ;;  %v1922_v49 = vadd.f32 %v1921_v37, %v1920_v9 }
 0x3d1   : > { %v1929_v18 = vadd.f32 %v1928_v51, %v1927_v15  ;;  %v1978_v59 = vadd.f32 %v1977_v31, %v1976_v55  ;;  %v1985_v0 = vadd.f32 %v1984_v45, %v1983_v19  ;;  %v2034_v41 = vadd.f32 %v2033_v39, %v2032_v42  ;;  %v4110_v42 = vld [vmem:[#allocation45_spill] sm:$0xff] }
 0x3d2   : > { %v2041_v28 = vadd.f32 %v2040_v7, %v2039_v21  ;;  %v2090_v24 = vadd.f32 %v2089_v16, %v2088_v17  ;;  %v2097_v8 = vadd.f32 %v2096_v43, %v2095_v4  ;;  %v1923_v62 = vrot.slane %v1922_v49, 1  ;;  %v4111_v17 = vld [vmem:[#allocation6_spill] sm:$0xff] }
 0x3d3   : > { %v1930_v33 = vrot.slane %v1929_v18, 1  ;;  %v1979_v5 = vrot.slane %v1978_v59, 1  ;;  %v1986_v10 = vrot.slane %v1985_v0, 1  ;;  %v2035_v56 = vrot.slane %v2034_v41, 1 }
 0x3d4   : > { %v2042_v50 = vrot.slane %v2041_v28, 1  ;;  %v2091_v35 = vrot.slane %v2090_v24, 1  ;;  %v2098_v48 = vrot.slane %v2097_v8, 1  ;;  %v1924_v36 = vadd.f32 %v1923_v62, %v1922_v49 }
 0x3d5   : > { %v1931_v46 = vadd.f32 %v1930_v33, %v1929_v18  ;;  %v1980_v26 = vadd.f32 %v1979_v5, %v1978_v59  ;;  %v1987_v44 = vadd.f32 %v1986_v10, %v1985_v0  ;;  %v2036_v22 = vadd.f32 %v2035_v56, %v2034_v41 }
 0x3d6   : > { %v2043_v29 = vadd.f32 %v2042_v50, %v2041_v28  ;;  %v2092_v40 = vadd.f32 %v2091_v35, %v2090_v24  ;;  %v2099_v63 = vadd.f32 %v2098_v48, %v2097_v8  ;;  %v2153_v13 = vsel %vm2132_vm10, %v1924_v36, %v3625_v61 }
 0x3d7   : > { %v2160_v11 = vsel %vm2132_vm10, %v1931_v46, %v3627_v53  ;;  %v2078_v58 = vadd.f32 %v2077_v3, %v3719_v2  ;;  %v2085_v34 = vadd.f32 %v2084_v38, %v3721_v57  ;;  %v2154_v9 = vsel %vm2134_vm11, %v3629_v47, %v2153_v13 }
 0x3d8   : > { %v2161_v15 = vsel %vm2134_vm11, %v3631_v32, %v2160_v11  ;;  %v2135_v61 = vsel %vm2134_vm11, %v3683_v1, %v3739_v27  ;;  %v2147_v53 = vsel %vm2134_vm11, %v3685_v14, %v3743_v25  ;;  %v2155_v2 = vsel %vm2136_vm12, %v1980_v26, %v2154_v9  ;;  %v4108_v14 = vld [vmem:[#allocation43_spill] sm:$0xff]  ;;  %v4109_v27 = vld [vmem:[#allocation44_spill] sm:$0xff] }
 0x3d9   : > { %v2162_v3 = vsel %vm2136_vm12, %v1987_v44, %v2161_v15  ;;  %v2137_v57 = vsel %vm2136_vm12, %v3725_v20, %v2135_v61  ;;  %v2148_v47 = vsel %vm2136_vm12, %v3727_v6, %v2147_v53  ;;  %v2156_v38 = vsel %vm2138_vm13, %v4108_v14, %v2155_v2 }
 0x3da   : > { %v2139_v32 = vsel %vm2138_vm13, %v3687_v30, %v2137_v57  ;;  %v2149_v1 = vsel %vm2138_vm13, %v3689_v60, %v2148_v47  ;;  %v2163_v25 = vsel %vm2138_vm13, %v4109_v27, %v2162_v3  ;;  %v2157_v55 = vsel %vm2140_vm14, %v2036_v22, %v2156_v38 }
 0x3db   : > { %v2141_v20 = vsel %vm2140_vm14, %v3729_v23, %v2139_v32  ;;  %v2150_v6 = vsel %vm2140_vm14, %v3731_v52, %v2149_v1  ;;  %v2164_v30 = vsel %vm2140_vm14, %v2043_v29, %v2163_v25  ;;  %v2158_v21 = vsel %vm2142_vm15, %v4110_v42, %v2157_v55 }
 0x3dc   : > { %v2143_v60 = vsel %vm2142_vm15, %v3691_v54, %v2141_v20  ;;  %v2151_v19 = vsel %vm2142_vm15, %v3693_v12, %v2150_v6  ;;  %v2165_v23 = vsel %vm2142_vm15, %v4111_v17, %v2164_v30  ;;  %v2159_v52 = vsel %vm2144_vm0, %v2092_v40, %v2158_v21 }
 0x3dd   : > { %v2145_v54 = vsel %vm2144_vm0, %v2078_v58, %v2143_v60  ;;  %v2152_v12 = vsel %vm2144_vm0, %v2085_v34, %v2151_v19  ;;  %v2166_v4 = vsel %vm2144_vm0, %v2099_v63, %v2165_v23  ;;  %2173 = vst [vmem:[%s245_s29 + $0x10] sm:$0xff] %v2159_v52 }
 0x3de   : > { %2171 = vst [vmem:[%s245_s29] sm:$0xff] %v2145_v54  ;;  %2172 = vst [vmem:[%s245_s29 + $0x8] sm:$0xff] %v2152_v12 }
 0x3df   : > { %2174 = vst [vmem:[%s245_s29 + $0x18] sm:$0xff] %v2166_v4 }
 0x3e0   : > { %2412 = shalt.err (!%p2409_p3)
}
 0x3e1   : > { %s2413_s17 = scalar_lea.hbm %s3828_s11, 512  ;;  %s2417_s20 = scalar_lea.hbm %s3881_s6, 1024 }
 0x3e2   : > { %p2414_p4 = scmp.ne.s32.totalorder %s3828_s11, %s2413_s17  ;;  %p2418_p9 = scmp.lt.s32.totalorder %s3828_s11, %s3881_s6 }
 0x3e3   : > { %p2419_p10 = scmp.lt.s32.totalorder %s2417_s20, %s2413_s17 }
 0x3e4   : > { %p2415_p7 = pnand %p2414_p4, %p2553_p5 }
 0x3e5   : > { %p2420_p11 = por %p2419_p10, %p2418_p9 }
 0x3e6   : > { %p2416_p8 = pneg %p2415_p7 }
 0x3e8   : > { %p2421_p12 = pnand %p2420_p11, %p2416_p8 }
 0x3ea   : > { %2424 = shalt.err (!%p2421_p12)
}
 0x3eb   : > { %2286 = dma.vmem_to_hbm [thread:$0]  (%p2553_p5), %s3830_s9, 512, %s3828_s11, %s2176_s12  }
 0x3ec PF: > { %p2292_p13 = scmp.ge.s32.totalorder %s2459_s24, 2  ;;  %s2202_s29 = sand.u32 1, %s2447_s21  }
 0x3ed   : > { %s2203_s25 = scalar_lea.sflag [#allocation3], %s2202_s29 }
 0x3ee   : > { %p2289_p0 = pnand %p2292_p13, %p2557_p6 }
 0x3f0   : > { %p2290_p1 = pneg %p2289_p0 }
 0x3f2   : > { %2442 = dma.done.wait (%p2290_p1), %s2203_s25, 512  }
 0x3f3   : > { %2444 = vsyncadd (%p2290_p1), %s2203_s25, 4294966784  ;;  %p16_p2 = scmp.ge.s32.totalorder %s2540_s27, 4   ;;  %s4112_s21 = smov %s2451_s22 }
 0x3f4   : > { %s4113_s22 = smov %s2455_s23  ;;  %s4114_s23 = smov %s2551_s30 }
 0x3f5   : > { %s4115_s24 = smov %s2540_s27  ;;  %18 = sbr.rel (!%p16_p2) target bundleno = 3 (0x3), region = 79 }
 0x3fa   :  { %2208 = vsyncpa [#allocation3], 1 }
 0x3fb   :  { %2210 = vsyncpa [#allocation3 + $0x1], 1 }

</bundles_post_ra>
